<compile_context>
chip_gen: v7x
topology: tpu7x:2x2x1
jax: 0.10.0
libtpu: 0.0.40
codegen_flags: <defaults>
</compile_context>

<pallas_src>
import jax
import jax.numpy as jnp
from jax import lax
from jax.experimental import pallas as pl
from jax.experimental.pallas import tpu as pltpu


def clip_loss_kernel(scale_ref, zi_ref, zj_ref,
                     row_lse_ref, col_lse_ref, diag_ref,
                     m_row, l_row):
    """One (row-tile i, column-tile j) step of the tiled CLIP loss.

    scale_ref   : SMEM (1,)  f32   raw logit_scale parameter (= log(1/T))
    zi_ref      : VMEM (tm, D)     z_i row tile (resident across j)
    zj_ref      : VMEM (tn, D)     z_j column tile (streamed over j)
    row_lse_ref : VMEM (tm, 1) f32 per-row logsumexp, written at j == last
    col_lse_ref : VMEM (1,1,tn)    per-(i, j) column partial logsumexp
    diag_ref    : VMEM (tm, 1) f32 diagonal logits for this row tile
    m_row,l_row : VMEM (tm, 1) f32 online row max / sum-exp scratch
    """
    i = pl.program_id(0)
    j = pl.program_id(1)
    n_j = pl.num_programs(1)

    tm = zi_ref.shape[0]
    tn = zj_ref.shape[0]

    logit_scale = jnp.exp(scale_ref[0])

    # One MXU matmul per tile feeds both cross-entropy directions; contract
    # the last dims of both operands so z_j is consumed un-transposed.
    # Inputs are bf16 (native MXU rate, half the DMA bytes); f32 accumulate.
    logits = lax.dot_general(
        zi_ref[...], zj_ref[...], (((1,), (1,)), ((), ())),
        preferred_element_type=jnp.float32) * logit_scale        # (tm, tn) f32

    # ---------- single exp pass shared by both softmax directions ----------
    # Shift by the scalar tile max: mathematically exact; numerically safe as
    # long as the logit spread within a tile stays well under ~170 (here
    # |cos sim| <= 1 and scale ~ 25, so the spread is ~50).
    row_max = jnp.max(logits, axis=1, keepdims=True)              # (tm, 1)
    m_tile = jnp.max(row_max)                                     # scalar
    p = jnp.exp(logits - m_tile)                                  # one EUP pass
    row_sum = jnp.sum(p, axis=1, keepdims=True)                   # (tm, 1)
    col_sum = jnp.sum(p, axis=0, keepdims=True)                   # (1, tn)

    # ---------- column direction: per-(i, j) partial logsumexp ----------
    # Combined across row tiles by a tiny JAX epilogue (logsumexp over i), so
    # no state crosses the row-grid axis and it can be megacore-"parallel".
    col_lse_ref[...] = (m_tile + jnp.log(col_sum)).reshape(1, 1, tn)

    # ---------- per-row-tile init ----------
    @pl.when(j == 0)
    def _init_row():
        m_row[...] = jnp.full_like(m_row, -jnp.inf)
        l_row[...] = jnp.zeros_like(l_row)
        diag_ref[...] = jnp.zeros_like(diag_ref)

    # ---------- row direction: online logsumexp across column tiles ----------
    m_new = jnp.maximum(m_row[...], row_max)
    l_row[...] = (l_row[...] * jnp.exp(m_row[...] - m_new)
                  + row_sum * jnp.exp(m_tile - m_new))
    m_row[...] = m_new

    # ---------- diagonal (labels == arange): only on tiles crossing it ----------
    row0 = i * tm
    col0 = j * tn

    @pl.when((row0 < col0 + tn) & (col0 < row0 + tm))
    def _diag():
        r_ids = row0 + lax.broadcasted_iota(jnp.int32, (tm, tn), 0)
        c_ids = col0 + lax.broadcasted_iota(jnp.int32, (tm, tn), 1)
        d = jnp.where(r_ids == c_ids, logits, 0.0)
        diag_ref[...] += jnp.sum(d, axis=1, keepdims=True)

    # ---------- row-tile finalize ----------
    @pl.when(j == n_j - 1)
    def _finalize_row():
        row_lse_ref[...] = m_row[...] + jnp.log(l_row[...])


# ------------------------- host-side wrapper -------------------------

_TILE_CANDIDATES = (1024, 512, 256, 128)
_VMEM_TILE_BUDGET = 44 * 1024 * 1024   # headroom inside v7x's 64 MiB physical


def _vmem_bytes_estimate(tm, tn, D, in_itemsize):
    inputs = 2 * 2 * (tm + tn) * D * in_itemsize     # double-buffered zi + zj
    temps = 4 * tm * tn * 4                          # logits / p / mask temporaries
    small = 8 * tm * 4 + 4 * tn * 4                  # row outputs + scratch + col block
    return inputs + temps + small


def _pick_tiles(B, D, in_itemsize):
    cands = [c for c in _TILE_CANDIDATES if c <= B and B % c == 0] or [B]
    for tm in cands:                    # prioritise tm: the HBM-traffic lever
        for tn in cands:
            if _vmem_bytes_estimate(tm, tn, D, in_itemsize) <= _VMEM_TILE_BUDGET:
                return tm, tn
    return cands[-1], cands[-1]


def clip_loss(z_i: jax.Array, z_j: jax.Array, logit_scale: jax.Array,
              *, block_rows: int | None = None, block_cols: int | None = None,
              compute_dtype=jnp.bfloat16) -> jax.Array:
    """Pallas equivalent of CLIPLoss.forward. Returns a scalar f32 loss.

    z_i, z_j: (B, D) embeddings.  They are cast to `compute_dtype` (bf16 by
    default) for the streamed DMA / MXU matmul; accumulation is f32.
    logit_scale: scalar or shape-(1,) f32 raw parameter (log(1/temperature)).
    In production B should be a multiple of the tile and D a multiple of 128.
    """
    B, D = z_i.shape
    assert z_j.shape == (B, D), (z_i.shape, z_j.shape)

    zi = z_i.astype(compute_dtype)
    zj = z_j.astype(compute_dtype)
    itemsize = jnp.dtype(compute_dtype).itemsize

    tm_d, tn_d = _pick_tiles(B, D, itemsize)
    tm = tm_d if block_rows is None else block_rows
    tn = tn_d if block_cols is None else block_cols
    assert B % tm == 0 and B % tn == 0, (B, tm, tn)
    n_i, n_j = B // tm, B // tn

    scale = jnp.asarray(logit_scale, jnp.float32).reshape((1,))

    vmem_limit = int(min(64 * 1024 * 1024,
                         max(32 * 1024 * 1024,
                             _vmem_bytes_estimate(tm, tn, D, itemsize) * 5 // 4)))

    grid_spec = pltpu.PrefetchScalarGridSpec(
        num_scalar_prefetch=0,
        grid=(n_i, n_j),
        in_specs=[
            pl.BlockSpec(memory_space=pltpu.MemorySpace.SMEM),   # logit_scale
            pl.BlockSpec((tm, D), lambda i, j: (i, 0)),          # z_i row tile
            pl.BlockSpec((tn, D), lambda i, j: (j, 0)),          # z_j col tile
        ],
        out_specs=[
            pl.BlockSpec((tm, 1), lambda i, j: (i, 0)),          # row lse
            pl.BlockSpec((1, 1, tn), lambda i, j: (i, 0, j)),    # col partial lse
            pl.BlockSpec((tm, 1), lambda i, j: (i, 0)),          # diagonal
        ],
        scratch_shapes=[
            pltpu.VMEM((tm, 1), jnp.float32),                    # m_row
            pltpu.VMEM((tm, 1), jnp.float32),                    # l_row
        ],
    )

    row_lse, col_part, diag = pl.pallas_call(
        clip_loss_kernel,
        out_shape=(
            jax.ShapeDtypeStruct((B, 1), jnp.float32),
            jax.ShapeDtypeStruct((n_i, 1, B), jnp.float32),
            jax.ShapeDtypeStruct((B, 1), jnp.float32),
        ),
        grid_spec=grid_spec,
        compiler_params=pltpu.CompilerParams(
            # No state crosses the row axis -> shardable across v7x's 2 TCs.
            dimension_semantics=("parallel", "arbitrary"),
            vmem_limit_bytes=vmem_limit,
        ),
    )(scale, zi, zj)

    # Tiny O(n_i * B) epilogue: combine per-row-tile column partials and reduce.
    col_lse = jax.nn.logsumexp(col_part.reshape(n_i, B), axis=0)        # (B,)
    loss = (jnp.sum(row_lse) + jnp.sum(col_lse)
            - 2.0 * jnp.sum(diag)) * (0.5 / B)
    return loss


def _clip_loss_ref(z_i, z_j, logit_scale):
    # Pure-JAX reference mirroring the PyTorch module.
    scale = jnp.exp(jnp.asarray(logit_scale, jnp.float32).reshape((1,))[0])
    logits = (z_i.astype(jnp.float32) @ z_j.astype(jnp.float32).T) * scale
    lse_r = jax.nn.logsumexp(logits, axis=1)
    lse_c = jax.nn.logsumexp(logits, axis=0)
    d = jnp.diagonal(logits)
    return 0.5 * (jnp.mean(lse_r - d) + jnp.mean(lse_c - d))


if __name__ == "__main__":
    key = jax.random.PRNGKey(0)
    k1, k2 = jax.random.split(key)

    # Small demo shapes consistent with the module: (B, D) embeddings, with
    # D a lane-width multiple so the demo follows the production layout.
    B, D = 256, 128
    z_i = jax.random.normal(k1, (B, D), dtype=jnp.float32)
    z_j = jax.random.normal(k2, (B, D), dtype=jnp.float32)
    # CLIP-style unit-normalised embeddings (keeps logits well scaled).
    z_i = z_i / jnp.linalg.norm(z_i, axis=-1, keepdims=True)
    z_j = z_j / jnp.linalg.norm(z_j, axis=-1, keepdims=True)

    # nn.Parameter(ones([]) * log(1/temperature))
    temperature = 0.04
    logit_scale = jnp.array([jnp.log(1.0 / temperature)], dtype=jnp.float32)

    # Small tiles here so the demo exercises the multi-tile / online-softmax /
    # diagonal-crossing paths (grid = 2x2); production defaults pick much
    # larger tiles via _pick_tiles.
    loss = clip_loss(z_i, z_j, logit_scale, block_rows=128, block_cols=128)
    jax.block_until_ready(loss)

    # Reference on the same bf16-cast embeddings the kernel consumes, so the
    # only differences are accumulation order / the single-exp rewrite.
    ref = _clip_loss_ref(z_i.astype(jnp.bfloat16), z_j.astype(jnp.bfloat16),
                         logit_scale)
    assert jnp.allclose(loss, ref, rtol=1e-3, atol=1e-3), (loss, ref)

    print("KERNEL_OK")
</pallas_src>

<mosaic_0001>
module attributes {stable_mosaic.version = 11 : i64} {
  func.func @clip_loss_kernel(%arg0: i32, %arg1: i32, %arg2: memref<1xf32, #tpu.memory_space<smem>>, %arg3: memref<128x128xbf16, #tpu.memory_space<vmem>>, %arg4: memref<128x128xbf16, #tpu.memory_space<vmem>>, %arg5: memref<128x1xf32, #tpu.memory_space<vmem>>, %arg6: memref<1x1x128xf32, #tpu.memory_space<vmem>>, %arg7: memref<128x1xf32, #tpu.memory_space<vmem>>, %arg8: memref<128x1xf32, #tpu.memory_space<vmem>>, %arg9: memref<128x1xf32, #tpu.memory_space<vmem>>) attributes {dimension_semantics = [#tpu.dimension_semantics<parallel>, #tpu.dimension_semantics<arbitrary>], iteration_bounds = array<i64: 2, 2>, scalar_prefetch = 0 : i64, scratch_operands = 2 : i64, tpu.core_type = #tpu.core_type<tc>, window_params = [{transform_indices = @transform_0, window_bounds = array<i64: 1>}, {transform_indices = @transform_1, window_bounds = array<i64: 128, 128>}, {transform_indices = @transform_2, window_bounds = array<i64: 128, 128>}, {transform_indices = @transform_3, window_bounds = array<i64: 128, 1>}, {transform_indices = @transform_4, window_bounds = array<i64: 1, 1, 128>}, {transform_indices = @transform_5, window_bounds = array<i64: 128, 1>}]} {
    %c0 = arith.constant 0 : index
    %0 = memref.load %arg2[%c0] : memref<1xf32, #tpu.memory_space<smem>>
    %1 = math.exp %0 : f32
    %c0_0 = arith.constant 0 : index
    %c0_1 = arith.constant 0 : index
    %2 = vector.load %arg3[%c0_0, %c0_1] : memref<128x128xbf16, #tpu.memory_space<vmem>>, vector<128x128xbf16>
    %c0_2 = arith.constant 0 : index
    %c0_3 = arith.constant 0 : index
    %3 = vector.load %arg4[%c0_2, %c0_3] : memref<128x128xbf16, #tpu.memory_space<vmem>>, vector<128x128xbf16>
    %cst = arith.constant dense<0.000000e+00> : vector<128x128xf32>
    %4 = tpu.matmul %2, %3, %cst {dimension_numbers = #tpu.dot_dimension_numbers<[1], [1], [0], [0], [0, 0, 1, 0], [], []>} : vector<128x128xbf16>, vector<128x128xbf16>, vector<128x128xf32> -> vector<128x128xf32>
    %5 = vector.broadcast %1 : f32 to vector<128x128xf32>
    %6 = arith.mulf %4, %5 : vector<128x128xf32>
    %cst_4 = arith.constant dense<0xFF800000> : vector<128xf32>
    %7 = vector.multi_reduction <maximumf>, %6, %cst_4 [1] : vector<128x128xf32> to vector<128xf32>
    %8 = vector.shape_cast %7 : vector<128xf32> to vector<128x1xf32>
    %9 = vector.shape_cast %8 : vector<128x1xf32> to vector<1x128x1xf32>
    %cst_5 = arith.constant dense<0xFF800000> : vector<1xf32>
    %10 = vector.multi_reduction <maximumf>, %9, %cst_5 [1, 2] : vector<1x128x1xf32> to vector<1xf32>
    %11 = vector.shape_cast %10 : vector<1xf32> to vector<1x1x1xf32>
    %12 = vector.extract %11[0, 0, 0] : f32 from vector<1x1x1xf32>
    %13 = vector.broadcast %12 : f32 to vector<128x128xf32>
    %14 = arith.subf %6, %13 : vector<128x128xf32>
    %15 = math.exp %14 : vector<128x128xf32>
    %cst_6 = arith.constant dense<0.000000e+00> : vector<128xf32>
    %16 = vector.multi_reduction <add>, %15, %cst_6 [1] : vector<128x128xf32> to vector<128xf32>
    %17 = vector.shape_cast %16 : vector<128xf32> to vector<128x1xf32>
    %cst_7 = arith.constant dense<0.000000e+00> : vector<128xf32>
    %18 = vector.multi_reduction <add>, %15, %cst_7 [0] : vector<128x128xf32> to vector<128xf32>
    %19 = vector.shape_cast %18 : vector<128xf32> to vector<1x128xf32>
    %20 = math.log %19 : vector<1x128xf32>
    %21 = vector.broadcast %12 : f32 to vector<1x128xf32>
    %22 = arith.addf %21, %20 : vector<1x128xf32>
    %23 = vector.shape_cast %22 : vector<1x128xf32> to vector<1x1x128xf32>
    %c0_8 = arith.constant 0 : index
    %c0_9 = arith.constant 0 : index
    %c0_10 = arith.constant 0 : index
    %24 = vector.load %arg6[%c0_8, %c0_9, %c0_10] : memref<1x1x128xf32, #tpu.memory_space<vmem>>, vector<1x1x128xf32>
    tpu.vector_store %arg6[%c0_8, %c0_9, %c0_10], %23 {strides = array<i32>} : memref<1x1x128xf32, #tpu.memory_space<vmem>>, vector<1x1x128xf32>,
    %c0_i32 = arith.constant 0 : i32
    %25 = arith.cmpi eq, %arg1, %c0_i32 : i32
    %26 = arith.extui %25 : i1 to i32
    %c0_i32_11 = arith.constant 0 : i32
    %27 = arith.cmpi ne, %26, %c0_i32_11 : i32
    scf.if %27 {
      %cst_27 = arith.constant 0xFF800000 : f32
      %54 = vector.broadcast %cst_27 : f32 to vector<128x1xf32>
      %c0_28 = arith.constant 0 : index
      %c0_29 = arith.constant 0 : index
      %55 = vector.load %arg8[%c0_28, %c0_29] : memref<128x1xf32, #tpu.memory_space<vmem>>, vector<128x1xf32>
      tpu.vector_store %arg8[%c0_28, %c0_29], %54 {strides = array<i32>} : memref<128x1xf32, #tpu.memory_space<vmem>>, vector<128x1xf32>,
      %cst_30 = arith.constant 0.000000e+00 : f32
      %56 = vector.broadcast %cst_30 : f32 to vector<128x1xf32>
      %c0_31 = arith.constant 0 : index
      %c0_32 = arith.constant 0 : index
      %57 = vector.load %arg9[%c0_31, %c0_32] : memref<128x1xf32, #tpu.memory_space<vmem>>, vector<128x1xf32>
      tpu.vector_store %arg9[%c0_31, %c0_32], %56 {strides = array<i32>} : memref<128x1xf32, #tpu.memory_space<vmem>>, vector<128x1xf32>,
      %cst_33 = arith.constant 0.000000e+00 : f32
      %58 = vector.broadcast %cst_33 : f32 to vector<128x1xf32>
      %c0_34 = arith.constant 0 : index
      %c0_35 = arith.constant 0 : index
      %59 = vector.load %arg7[%c0_34, %c0_35] : memref<128x1xf32, #tpu.memory_space<vmem>>, vector<128x1xf32>
      tpu.vector_store %arg7[%c0_34, %c0_35], %58 {strides = array<i32>} : memref<128x1xf32, #tpu.memory_space<vmem>>, vector<128x1xf32>,
    } else {
    }
    %c0_12 = arith.constant 0 : index
    %c0_13 = arith.constant 0 : index
    %28 = vector.load %arg8[%c0_12, %c0_13] : memref<128x1xf32, #tpu.memory_space<vmem>>, vector<128x1xf32>
    %29 = arith.maximumf %28, %8 : vector<128x1xf32>
    %c0_14 = arith.constant 0 : index
    %c0_15 = arith.constant 0 : index
    %30 = vector.load %arg9[%c0_14, %c0_15] : memref<128x1xf32, #tpu.memory_space<vmem>>, vector<128x1xf32>
    %c0_16 = arith.constant 0 : index
    %c0_17 = arith.constant 0 : index
    %31 = vector.load %arg8[%c0_16, %c0_17] : memref<128x1xf32, #tpu.memory_space<vmem>>, vector<128x1xf32>
    %32 = arith.subf %31, %29 : vector<128x1xf32>
    %33 = math.exp %32 : vector<128x1xf32>
    %34 = arith.mulf %30, %33 : vector<128x1xf32>
    %35 = vector.broadcast %12 : f32 to vector<128x1xf32>
    %36 = arith.subf %35, %29 : vector<128x1xf32>
    %37 = math.exp %36 : vector<128x1xf32>
    %38 = arith.mulf %17, %37 : vector<128x1xf32>
    %39 = arith.addf %34, %38 : vector<128x1xf32>
    %c0_18 = arith.constant 0 : index
    %c0_19 = arith.constant 0 : index
    %40 = vector.load %arg9[%c0_18, %c0_19] : memref<128x1xf32, #tpu.memory_space<vmem>>, vector<128x1xf32>
    tpu.vector_store %arg9[%c0_18, %c0_19], %39 {strides = array<i32>} : memref<128x1xf32, #tpu.memory_space<vmem>>, vector<128x1xf32>,
    %c0_20 = arith.constant 0 : index
    %c0_21 = arith.constant 0 : index
    %41 = vector.load %arg8[%c0_20, %c0_21] : memref<128x1xf32, #tpu.memory_space<vmem>>, vector<128x1xf32>
    tpu.vector_store %arg8[%c0_20, %c0_21], %29 {strides = array<i32>} : memref<128x1xf32, #tpu.memory_space<vmem>>, vector<128x1xf32>,
    %c128_i32 = arith.constant 128 : i32
    %42 = arith.muli %arg0, %c128_i32 : i32
    %c128_i32_22 = arith.constant 128 : i32
    %43 = arith.muli %arg1, %c128_i32_22 : i32
    %c128_i32_23 = arith.constant 128 : i32
    %44 = arith.addi %43, %c128_i32_23 : i32
    %45 = arith.cmpi slt, %42, %44 : i32
    %c128_i32_24 = arith.constant 128 : i32
    %46 = arith.addi %42, %c128_i32_24 : i32
    %47 = arith.cmpi slt, %43, %46 : i32
    %48 = arith.andi %45, %47 : i1
    %49 = arith.extui %48 : i1 to i32
    %c0_i32_25 = arith.constant 0 : i32
    %50 = arith.cmpi ne, %49, %c0_i32_25 : i32
    scf.if %50 {
      %54 = tpu.iota {dimensions = array<i32: 0>} : vector<128x128xi32>
      %55 = vector.broadcast %42 : i32 to vector<128x128xi32>
      %56 = arith.addi %55, %54 : vector<128x128xi32>
      %57 = tpu.iota {dimensions = array<i32: 1>} : vector<128x128xi32>
      %58 = vector.broadcast %43 : i32 to vector<128x128xi32>
      %59 = arith.addi %58, %57 : vector<128x128xi32>
      %60 = arith.cmpi eq, %56, %59 : vector<128x128xi32>
      %cst_27 = arith.constant 0.000000e+00 : f32
      %61 = vector.broadcast %cst_27 : f32 to vector<128x128xf32>
      %62 = arith.select %60, %6, %61 : vector<128x128xi1>, vector<128x128xf32>
      %c0_28 = arith.constant 0 : index
      %c0_29 = arith.constant 0 : index
      %63 = vector.load %arg7[%c0_28, %c0_29] : memref<128x1xf32, #tpu.memory_space<vmem>>, vector<128x1xf32>
      %cst_30 = arith.constant dense<0.000000e+00> : vector<128xf32>
      %64 = vector.multi_reduction <add>, %62, %cst_30 [1] : vector<128x128xf32> to vector<128xf32>
      %65 = vector.shape_cast %64 : vector<128xf32> to vector<128x1xf32>
      %66 = arith.addf %63, %65 : vector<128x1xf32>
      %c0_31 = arith.constant 0 : index
      %c0_32 = arith.constant 0 : index
      %67 = vector.load %arg7[%c0_31, %c0_32] : memref<128x1xf32, #tpu.memory_space<vmem>>, vector<128x1xf32>
      tpu.vector_store %arg7[%c0_31, %c0_32], %66 {strides = array<i32>} : memref<128x1xf32, #tpu.memory_space<vmem>>, vector<128x1xf32>,
    } else {
    }
    %c1_i32 = arith.constant 1 : i32
    %51 = arith.cmpi eq, %arg1, %c1_i32 : i32
    %52 = arith.extui %51 : i1 to i32
    %c0_i32_26 = arith.constant 0 : i32
    %53 = arith.cmpi ne, %52, %c0_i32_26 : i32
    scf.if %53 {
      %c0_27 = arith.constant 0 : index
      %c0_28 = arith.constant 0 : index
      %54 = vector.load %arg8[%c0_27, %c0_28] : memref<128x1xf32, #tpu.memory_space<vmem>>, vector<128x1xf32>
      %c0_29 = arith.constant 0 : index
      %c0_30 = arith.constant 0 : index
      %55 = vector.load %arg9[%c0_29, %c0_30] : memref<128x1xf32, #tpu.memory_space<vmem>>, vector<128x1xf32>
      %56 = math.log %55 : vector<128x1xf32>
      %57 = arith.addf %54, %56 : vector<128x1xf32>
      %c0_31 = arith.constant 0 : index
      %c0_32 = arith.constant 0 : index
      %58 = vector.load %arg5[%c0_31, %c0_32] : memref<128x1xf32, #tpu.memory_space<vmem>>, vector<128x1xf32>
      tpu.vector_store %arg5[%c0_31, %c0_32], %57 {strides = array<i32>} : memref<128x1xf32, #tpu.memory_space<vmem>>, vector<128x1xf32>,
    } else {
    }
    return
  }
  func.func @transform_0(%arg0: i32, %arg1: i32) -> i32 {
    %c0_i32 = arith.constant 0 : i32
    %c0_i32_0 = arith.constant 0 : i32
    return %c0_i32 : i32
  }
  func.func @transform_1(%arg0: i32, %arg1: i32) -> (i32, i32) {
    %c0_i32 = arith.constant 0 : i32
    %c0_i32_0 = arith.constant 0 : i32
    return %arg0, %c0_i32 : i32, i32
  }
  func.func @transform_2(%arg0: i32, %arg1: i32) -> (i32, i32) {
    %c0_i32 = arith.constant 0 : i32
    %c0_i32_0 = arith.constant 0 : i32
    return %arg1, %c0_i32 : i32, i32
  }
  func.func @transform_3(%arg0: i32, %arg1: i32) -> (i32, i32) {
    %c0_i32 = arith.constant 0 : i32
    %c0_i32_0 = arith.constant 0 : i32
    return %arg0, %c0_i32 : i32, i32
  }
  func.func @transform_4(%arg0: i32, %arg1: i32) -> (i32, i32, i32) {
    %c0_i32 = arith.constant 0 : i32
    %c0_i32_0 = arith.constant 0 : i32
    return %arg0, %c0_i32, %arg1 : i32, i32, i32
  }
  func.func @transform_5(%arg0: i32, %arg1: i32) -> (i32, i32) {
    %c0_i32 = arith.constant 0 : i32
    %c0_i32_0 = arith.constant 0 : i32
    return %arg0, %c0_i32 : i32, i32
  }
}

</mosaic_0001>

<bundles_post_ra>
// kernel: tpu_custom_call.1
= control target key start
LH: loop header
LB: loop body
LE: loop exit
PB: predicated region body
PF: predicated region fallthrough
CT: control target
= control target key end

     0   :  { %s2949_s0 = inlined_call_operand.<no memory space> [shape: f32[1], index: 0, kind: input, shape index: {}]   ;;  %s2950_s1 = inlined_call_operand.hbm [shape: bf16[256,128], index: 1, kind: input, shape index: {}]   ;;  %s2951_s2 = inlined_call_operand.hbm [shape: bf16[256,128], index: 2, kind: input, shape index: {}]   ;;  %s2952_s3 = inlined_call_operand.vmem [shape: f32[256,1], index: 3, kind: output, shape index: {0}]   ;;  %s2953_s4 = inlined_call_operand.hbm [shape: f32[2,1,256], index: 4, kind: output, shape index: {1}]   ;;  %s2954_s5 = inlined_call_operand.vmem [shape: f32[256,1], index: 5, kind: output, shape index: {2}]  }
   0x1   :  { %2973 = sst [smem:[#allocation24_spill]] %s2950_s1 }
   0x2   :  { %2974 = sst [smem:[#allocation25_spill]] %s2953_s4 }
   0x3   :  { %11 = sst [smem:[#allocation4]] %s2949_s0 }
   0x4   :  { %12 = vsyncpa [#allocation6], 0 }
   0x5   :  { %14 = vsyncpa [#allocation6 + $0x1], 0 }
   0x6   :  { %15 = vsyncpa [#allocation9], 0 }
   0x7   :  { %17 = vsyncpa [#allocation9 + $0x1], 0 }
   0x8   :  { %18 = vsyncpa [#allocation7], 0 }
   0x9   :  { %20 = vsyncpa [#allocation7 + $0x1], 0  ;;  %s2103_s20 = smov 0   ;;  %s2105_s21 = smov 0  }
   0xa   :  { %s2107_s22 = smov 0   ;;  %s2109_s23 = smov 0  }
   0xb   :  { %s2111_s24 = smov 0   ;;  %s2113_s25 = smov 0  }
   0xc   :  { %s2115_s26 = smov 0   ;;  %s2117_s0 = smov 0  }
   0xd   :  { %s2119_s27 = smov 0   ;;  %s2121_s28 = smov 0  }
   0xe   :  { %s2123_s29 = smov 0   ;;  %s2125_s30 = smov 0  }
   0xf   :  { %s2127_s6 = smov 0   ;;  %s2129_s7 = smov 0  }
  0x10 LB: > { %2975 = sst [smem:[#allocation14_spill]] %s2045_s28  ;;  %s2955_s8 = sadd.s32 4294967295, %s2061_s7   ;;  %s2061_s7 = sphi %s2129_s7, %s26_s7   ;;  %s2057_s6 = sphi %s2127_s6, %s3022_s6   ;;  %s2053_s30 = sphi %s2125_s30, %s3021_s30   ;;  %s2049_s29 = sphi %s2123_s29, %s3033_s29   ;;  %s2045_s28 = sphi %s2121_s28, %s3019_s28   ;;  %s2041_s27 = sphi %s2119_s27, %s3032_s27   ;;  %s2037_s0 = sphi %s2117_s0, %s3031_s0   ;;  %s2033_s26 = sphi %s2115_s26, %s3030_s26   ;;  %s2029_s25 = sphi %s2113_s25, %s3029_s25   ;;  %s2025_s24 = sphi %s2111_s24, %s3028_s24   ;;  %s2021_s23 = sphi %s2109_s23, %s3027_s23   ;;  %s2017_s22 = sphi %s2107_s22, %s3026_s22   ;;  %s2013_s21 = sphi %s2105_s21, %s3025_s21   ;;  %s2009_s20 = sphi %s2103_s20, %s3024_s20  }
  0x11   : > { %2976 = sst [smem:[#allocation15_spill]] %s2053_s30  ;;  %p73_p0 = scmp.ne.s32.totalorder %s2041_s27, %s2037_s0 }
  0x12   : > { %2977 = sst [smem:[#allocation16_spill]] %s2057_s6  ;;  %p2957_p1 = scmp.eq.s32.totalorder %s2061_s7, 0 }
  0x13   : > { %p79_p2 = scmp.ne.s32.totalorder %s2037_s0, %s2033_s26  ;;  %p2180_p3 = scmp.eq.s32.totalorder %s2955_s8, 0 }
  0x14   : > { %p75_p4 = por %p2957_p1, %p73_p0  ;;  %p2956_p6 = scmp.lt.s32.totalorder %s2061_s7, 4 }
  0x15   : > { %p2188_p5 = por %p2180_p3, %p79_p2  ;;  %s212_s13 = sand.u32 1, %s2041_s27  }
  0x16   : > { %s1498_s14 = sshll.u32 %s2057_s6, 10  ;;  %s1461_s15 = sshll.u32 %s212_s13, 6 }
  0x17   : > { %s2979_s12 = scalar_select %p2188_p5, 1, 0 }
  0x18   : > { %s2980_s1 = sld [smem:[#allocation24_spill]]  ;;  %s216_s19 = scalar_lea.vmem [#allocation5], %s1461_s15 }
  0x19   : > { %s223_s26 = sshll.u32 %s216_s19, 4  ;;  %p2202_p7 = pnand %p2956_p6, %p75_p4  ;;  %s2206_s26 = int_to_ptr.vmem [resolvable:$true] %s223_s26 }
  0x1a   : > { %s2208_s9 = scalar_lea.sflag [#allocation6], %s212_s13 }
  0x1b   : > { %p1853_p9 = pneg %p2202_p7 }
  0x1e   : > { %s2198_s18 = scalar_lea.hbm %s2980_s1, %s1498_s14  ;;  %s1856_s17 = scalar_lea.hbm %s2980_s1, 2048 }
  0x1f   : > { %s1851_s16 = scalar_lea.hbm %s2198_s18, 1024  ;;  %p1857_p12 = scmp.lt.u32.totalorder %s2198_s18, %s2980_s1 }
  0x20   : > { %p1852_p8 = scmp.ne.s32.totalorder %s2198_s18, %s1851_s16  ;;  %p1858_p13 = scmp.lt.u32.totalorder %s1856_s17, %s1851_s16 }
  0x21   : > { %p1860_p2 = scmp.lt.u32.totalorder %s1851_s16, %s2198_s18 }
  0x22   : > { %p1854_p10 = pnand %p1853_p9, %p1852_p8  ;;  %p1859_p0 = por %p1858_p13, %p1857_p12 }
  0x24   : > { %p1855_p11 = pneg %p1854_p10  ;;  %p1861_p4 = por %p1860_p2, %p1859_p0 }
  0x26   : > { %p1862_p6 = pnand %p1861_p4, %p1855_p11 }
  0x28   : > { %1865 = shalt.err (!%p1862_p6)
}
  0x29   : > { %s1866_s13 = scalar_lea.vmem %s2206_s26, 1024  ;;  %s2063_s14 = smov [#allocation5]  }
  0x2a   : > { %p1867_p8 = scmp.ne.s32.totalorder %s2206_s26, %s1866_s13  ;;  %s1871_s15 = sshll.u32 %s2063_s14, 4  ;;  %s1872_s15 = int_to_ptr.vmem [resolvable:$false] %s1871_s15 }
  0x2b   : > { %s1873_s8 = scalar_lea.vmem %s1872_s15, 2048  ;;  %p1874_p5 = scmp.lt.s32.totalorder %s2206_s26, %s1872_s15 }
  0x2c   : > { %p1869_p10 = pnand %p1867_p8, %p1853_p9  ;;  %p1875_p12 = scmp.lt.s32.totalorder %s1873_s8, %s1866_s13 }
  0x2e   : > { %p1870_p1 = pneg %p1869_p10  ;;  %p1876_p13 = por %p1875_p12, %p1874_p5 }
  0x30   : > { %p1877_p0 = pnand %p1876_p13, %p1870_p1 }
  0x32   : > { %1880 = shalt.err (!%p1877_p0)
}
  0x33   : > { %s2959_s16 = smov 64   ;;  %s2960_s17 = smov 4  }
  0x34   : > { %1577 = dma.hbm_to_vmem [thread:$0]  (!%p2202_p7), %s2198_s18, 1024, %s2206_s26, %s2208_s9, %s2959_s16, %s2959_s16, %s2960_s17  }
  0x35   : > { %p1467_p1 = scmp.ge.s32.totalorder %s2061_s7, 1  ;;  %p252_p5 = scmp.lt.s32.totalorder %s2061_s7, 5 }
  0x36   : > { %s2982_s19 = sadd.s32 4294967295, %s2061_s7   ;;  %s1458_s10 = sadd.s32 4294967294, %s2061_s7  }
  0x37   : > { %p2243_p6 = scmp.eq.s32.totalorder %s2982_s19, 3  ;;  %p2247_p9 = pnand %p1467_p1, %p252_p5 }
  0x38   : > { %s35_s15 = sadd.s32 1, %s2053_s30  ;;  %s92_s9 = sadd.s32 1, %s2029_s25 }
  0x39   : > { %p36_p7 = scmp.ge.s32.totalorder %s35_s15, 2  ;;  %p99_p11 = scmp.ne.s32.totalorder %s2029_s25, %s2025_s24 }
  0x3a   : > { %p105_p2 = scmp.ne.s32.totalorder %s2025_s24, %s2021_s23  ;;  %s2986_s18 = sadd.s32 1, %s2057_s6 }
  0x3b   : > { %s3035_s15 = smov (%p36_p7, %s35_s15), 0  ;;  %s3037_s18 = smov (!%p36_p7, %s2986_s18), %s2057_s6 }
  0x3c   : > { %2985 = sst [smem:[#allocation17_spill]] %s3035_s15  ;;  %s89_s26 = ssub.s32 %s2053_s30, %s3035_s15 }
  0x3d   : > { %s146_s8 = sadd.s32 1, %s2017_s22  ;;  %p40_p4 = scmp.ge.s32.totalorder %s3037_s18, 2 }
  0x3e   : > { %p90_p8 = scmp.eq.s32.totalorder %s89_s26, 0  ;;  %p2268_p10 = por %p105_p2, %p2180_p3 }
  0x3f   : > { %p156_p12 = scmp.ne.s32.totalorder %s2017_s22, %s2013_s21  ;;  %s3039_s18 = smov (%p40_p4, %s3037_s18), 0 }
  0x40   : > { %s2987_s23 = scalar_select %p2268_p10, 1, 0 }
  0x41   : > { %2988 = sst [smem:[#allocation18_spill]] %s3039_s18  ;;  %s63_s16 = ssub.s32 %s2057_s6, %s3039_s18 }
  0x42   : > { %s2277_s19 = scalar_select %p90_p8, %s2029_s25, %s92_s9  }
  0x43   : > { %p2283_p13 = por %p2243_p6, %p156_p12  ;;  %p64_p0 = scmp.eq.s32.totalorder %s63_s16, 0 }
  0x44   : > { %s143_s11 = sor.u32 %s89_s26, %s63_s16  ;;  %p162_p1 = scmp.ne.s32.totalorder %s2013_s21, %s2009_s20 }
  0x45   : > { %s2989_s17 = scalar_select %p2283_p13, 1, 0 }
  0x46   : > { %p144_p3 = scmp.eq.s32.totalorder %s143_s11, 0  ;;  %s2990_s1 = sadd.s32 1, %s2041_s27 }
  0x47   : > { %s2292_s15 = scalar_select %p64_p0, %s2041_s27, %s2990_s1  }
  0x48   : > { %s2295_s4 = scalar_select %p144_p3, %s2017_s22, %s146_s8  }
  0x49   : > { %p163_p5 = scmp.eq.s32.totalorder %s1458_s10, 3  ;;  %s233_s28 = sand.u32 1, %s2029_s25  }
  0x4a   : > { %p2991_p7 = scmp.eq.s32.totalorder %s2061_s7, 0  ;;  %s1464_s13 = sshll.u32 %s233_s28, 6 }
  0x4b   : > { %p2303_p6 = por %p163_p5, %p162_p1  ;;  %s1499_s18 = sshll.u32 %s2053_s30, 10 }
  0x4c   : > { %p101_p2 = por %p99_p11, %p2991_p7  ;;  %s237_s6 = scalar_lea.vmem [#allocation8], %s1464_s13 }
  0x4d   : > { %s2992_s9 = scalar_select %p2303_p6, 1, 0 }
  0x4e   : > { %s244_s16 = sshll.u32 %s237_s6, 4  ;;  %s2311_s1 = scalar_lea.hbm %s2951_s2, %s1499_s18  ;;  %s2313_s16 = int_to_ptr.vmem [resolvable:$true] %s244_s16 }
  0x4f   : > { %p2993_p11 = scmp.lt.s32.totalorder %s2061_s7, 4  ;;  %s2321_s8 = scalar_lea.sflag [#allocation9], %s233_s28 }
  0x50   : > { %s1881_s6 = scalar_lea.hbm %s2311_s1, 1024  ;;  %s1886_s26 = scalar_lea.hbm %s2951_s2, 2048 }
  0x51   : > { %p2317_p4 = pnand %p2993_p11, %p101_p2  ;;  %p1882_p8 = scmp.ne.s32.totalorder %s2311_s1, %s1881_s6 }
  0x52   : > { %p1887_p1 = scmp.lt.u32.totalorder %s2311_s1, %s2951_s2  ;;  %p1888_p5 = scmp.lt.u32.totalorder %s1886_s26, %s1881_s6 }
  0x53   : > { %p1883_p12 = pneg %p2317_p4  ;;  %p1890_p2 = scmp.lt.u32.totalorder %s1881_s6, %s2311_s1 }
  0x54   : > { %p1889_p7 = por %p1888_p5, %p1887_p1 }
  0x55   : > { %p1884_p0 = pnand %p1883_p12, %p1882_p8 }
  0x56   : > { %p1891_p11 = por %p1890_p2, %p1889_p7 }
  0x57   : > { %p1885_p3 = pneg %p1884_p0 }
  0x59   : > { %p1892_p6 = pnand %p1891_p11, %p1885_p3 }
  0x5b   : > { %1895 = shalt.err (!%p1892_p6)
}
  0x5c   : > { %s1896_s28 = scalar_lea.vmem %s2313_s16, 1024  ;;  %s2066_s18 = smov [#allocation8]  }
  0x5d   : > { %p1897_p8 = scmp.ne.s32.totalorder %s2313_s16, %s1896_s28  ;;  %s1901_s13 = sshll.u32 %s2066_s18, 4  ;;  %s1902_s13 = int_to_ptr.vmem [resolvable:$false] %s1901_s13 }
  0x5e   : > { %s1903_s30 = scalar_lea.vmem %s1902_s13, 2048  ;;  %p1904_p10 = scmp.lt.s32.totalorder %s2313_s16, %s1902_s13 }
  0x5f   : > { %p1899_p0 = pnand %p1897_p8, %p1883_p12  ;;  %p1905_p1 = scmp.lt.s32.totalorder %s1903_s30, %s1896_s28 }
  0x61   : > { %p1900_p13 = pneg %p1899_p0  ;;  %p1906_p5 = por %p1905_p1, %p1904_p10 }
  0x63   : > { %p1907_p7 = pnand %p1906_p5, %p1900_p13 }
  0x65   : > { %1910 = shalt.err (!%p1907_p7)
}
  0x66   : > { %s2995_s6 = smov 4   ;;  %s2996_s26 = smov 64  }
  0x67   : > { %1580 = dma.hbm_to_vmem [thread:$0]  (!%p2317_p4), %s2311_s1, 1024, %s2313_s16, %s2321_s8, %s2996_s26, %s2996_s26, %s2995_s6  }
  0x68   : > { %256 = sbr.rel (%p2247_p9) target bundleno = 1118 (0x45e), region = 32 }
  0x6f   : > { %s258_s11 = sand.u32 1, %s2037_s0   ;;  %p2997_p10 = scmp.ne.s32.totalorder %s2979_s12, 0 }
  0x70   : > { %s1468_s18 = sshll.u32 %s258_s11, 6  ;;  %s259_s28 = scalar_lea.sflag [#allocation6], %s258_s11 }
  0x71   : > { %s2355_s13 = scalar_lea.vmem [#allocation5], %s1468_s18 }
  0x72   : > { %1996 = dma.done.wait (%p2997_p10), %s259_s28, 1024  }
  0x73   : > { %1998 = vsyncadd (%p2997_p10), %s259_s28, 4294966272  ;;  %s267_s10 = sand.u32 1, %s2025_s24   ;;  %p2998_p9 = scmp.ne.s32.totalorder %s2987_s23, 0 }
  0x74   : > { %s1469_s30 = sshll.u32 %s267_s10, 6  ;;  %s268_s16 = scalar_lea.sflag [#allocation9], %s267_s10 }
  0x75   : > { %s2362_s1 = scalar_lea.vmem [#allocation8], %s1469_s30 }
  0x76   : > { %2000 = dma.done.wait (%p2998_p9), %s268_s16, 1024  }
  0x77   : > { %2002 = vsyncadd (%p2998_p9), %s268_s16, 4294966272  ;;  %s1470_s14 = sshll.u32 %s2049_s29, 4  ;;  %v1703_v0 = vld [vmem:[%s2362_s1] sm:$0xff]   ;;  %v1704_v1 = vld [vmem:[%s2362_s1 + $0x8] sm:$0xff]   ;;  %s327_s28 = sld [smem:[#allocation4]] }
  0x78   : > { %p315_p13 = scmp.lt.s32.totalorder %s1470_s14, 31  ;;  %1516 = vmatprep.subr.bf16.mxu0 %v1703_v0  ;;  %1548 = vmatprep.subr.bf16.mxu1 %v1703_v0  ;;  %v1705_v2 = vld [vmem:[%s2362_s1 + $0x10] sm:$0xff]   ;;  %v1711_v3 = vld [vmem:[%s2355_s13] sm:$0xff]   ;;  %v1706_v6 = vld [vmem:[%s2362_s1 + $0x18] sm:$0xff]   ;;  %s303_s30 = sand.u32 1, %s2013_s21  }
  0x79   : > { %1517 = vmatpush3.bf16.xpose.msra.mxu0 %v1703_v0  ;;  %1556 = vmatpush3.bf16.xpose.msra.mxu1 %v1703_v0  ;;  %v1712_v4 = vld [vmem:[%s2355_s13 + $0x20] sm:$0xff]   ;;  %v1708_v10 = vld [vmem:[%s2362_s1 + $0x28] sm:$0xff]   ;;  %v1709_v11 = vld [vmem:[%s2362_s1 + $0x30] sm:$0xff]   ;;  %s2529_s16 = scalar_lea.vmem [#allocation10], %s303_s30 }
  0x7a   : > { %s3041_s14 = smov (!%p315_p13, %s1470_s14), 31  ;;  %1518 = vmatprep.subr.bf16.mxu0 %v1704_v1  ;;  %1549 = vmatprep.subr.bf16.mxu1 %v1704_v1  ;;  %v1707_v8 = vld [vmem:[%s2362_s1 + $0x20] sm:$0xff]   ;;  %v1710_v12 = vld [vmem:[%s2362_s1 + $0x38] sm:$0xff]   ;;  %v1713_v13 = vld [vmem:[%s2355_s13 + $0x8] sm:$0xff]   ;;  %s3004_s1 = sld [smem:[#allocation14_spill]] }
  0x7b   : > { %s1471_s12 = sshll.u32 %s3041_s14, 3  ;;  %1532 = vmatprep.mubr.bf16.mxu0 %v1711_v3  ;;  %1540 = vmatprep.mubr.bf16.mxu1 %v1712_v4  ;;  %v1714_v14 = vld [vmem:[%s2355_s13 + $0x28] sm:$0xff]   ;;  %v1715_v15 = vld [vmem:[%s2355_s13 + $0x10] sm:$0xff]   ;;  %v1717_v17 = vld [vmem:[%s2355_s13 + $0x18] sm:$0xff]  }
  0x7c   : > { %s2372_s26 = scalar_lea.vmem %s2952_s3, %s1471_s12  ;;  %s2377_s23 = scalar_lea.vmem %s2954_s5, %s1471_s12  ;;  %v1716_v16 = vld [vmem:[%s2355_s13 + $0x30] sm:$0xff]   ;;  %v1718_v18 = vld [vmem:[%s2355_s13 + $0x38] sm:$0xff]  }
  0x7d   : > { %v328_v5 = vstv %s327_s28 }
  0x7e   : > { %v329_v7 = vmul.f32 1.442695, %v328_v5 }
  0x80   : > { %1719 = vpow2.f32 %v329_v7  ;;  %p1490_p6 = scmp.ne.s32.totalorder %s3004_s1, 0 }
  0x81   : > { %1519 = vmatpush3.bf16.xpose.msra.mxu0 %v1704_v1  ;;  %1557 = vmatpush3.bf16.xpose.msra.mxu1 %v1704_v1  ;;  %vm738_vm0 = vcmask (!%p1490_p6), 7168  }
  0x82   : > { %1520 = vmatprep.subr.bf16.mxu0 %v1705_v2  ;;  %1550 = vmatprep.subr.bf16.mxu1 %v1705_v2 }
  0x89   : > { %1521 = vmatpush3.bf16.xpose.msra.mxu0 %v1705_v2  ;;  %1558 = vmatpush3.bf16.xpose.msra.mxu1 %v1705_v2 }
  0x8a   : > { %1522 = vmatprep.subr.bf16.mxu0 %v1706_v6  ;;  %1551 = vmatprep.subr.bf16.mxu1 %v1706_v6  ;;  %v1720_v9 = vpop.eup %1719 }
  0x8b   : > { %1564 = vpush %v1720_v9 }
  0x91   : > { %1523 = vmatpush3.bf16.xpose.msra.mxu0 %v1706_v6  ;;  %1559 = vmatpush3.bf16.xpose.msra.mxu1 %v1706_v6 }
  0x92   : > { %1524 = vmatprep.subr.bf16.mxu0 %v1707_v8  ;;  %1552 = vmatprep.subr.bf16.mxu1 %v1707_v8 }
  0x99   : > { %1525 = vmatpush3.bf16.xpose.msra.mxu0 %v1707_v8  ;;  %1560 = vmatpush3.bf16.xpose.msra.mxu1 %v1707_v8 }
  0x9a   : > { %1526 = vmatprep.subr.bf16.mxu0 %v1708_v10  ;;  %1553 = vmatprep.subr.bf16.mxu1 %v1708_v10 }
  0xa1   : > { %1527 = vmatpush3.bf16.xpose.msra.mxu0 %v1708_v10  ;;  %1561 = vmatpush3.bf16.xpose.msra.mxu1 %v1708_v10 }
  0xa2   : > { %1528 = vmatprep.subr.bf16.mxu0 %v1709_v11  ;;  %1554 = vmatprep.subr.bf16.mxu1 %v1709_v11 }
  0xa9   : > { %1529 = vmatpush3.bf16.xpose.msra.mxu0 %v1709_v11  ;;  %1562 = vmatpush3.bf16.xpose.msra.mxu1 %v1709_v11 }
  0xaa   : > { %1530 = vmatprep.subr.bf16.mxu0 %v1710_v12  ;;  %1555 = vmatprep.subr.bf16.mxu1 %v1710_v12 }
  0xb1   : > { %1531 = vmatpush3.bf16.xpose.msra.mxu0 %v1710_v12  ;;  %1563 = vmatpush3.bf16.xpose.msra.mxu1 %v1710_v12 }
  0xb8   : > { %1533 = vmatmul.mubr.bf16.vlgmr.msra.gmra.mrb[0].mxu0 %v1713_v13  ;;  %1541 = vmatmul.mubr.bf16.vlgmr.msra.gmra.mrb[0].mxu1 %v1714_v14 }
  0xb9   : > { %1536 = vmatprep.mubr.bf16.mxu0 %v1715_v15  ;;  %1544 = vmatprep.mubr.bf16.mxu1 %v1716_v16 }
  0xbc   : > { %s1565_s10 = spop %1564 }
  0xbd   : > { %v557_v19 = vstv %s1565_s10 }
  0xc0   : > { %1537 = vmatmul.mubr.bf16.gmra.mrb[4].mxu0 %v1717_v17  ;;  %1545 = vmatmul.mubr.bf16.gmra.mrb[4].mxu1 %v1718_v18 }
 0x18b   : > { %v1534_v20 = vpop.f32.mrb[0].mxu0  ;;  %v1542_v21 = vpop.f32.mrb[0].mxu1 }
 0x18c   : > { %v2395_v22 = vmul.f32 %v1534_v20, %v557_v19  ;;  %v2397_v23 = vmul.f32 %v1542_v21, %v557_v19  ;;  %v494_v24 = vpop.f32.mrb[1].mxu0  ;;  %v526_v25 = vpop.f32.mrb[1].mxu1 }
 0x18d   : > { %v1535_v26 = vpop.f32.mrb[2].mxu0  ;;  %v1543_v27 = vpop.f32.mrb[2].mxu1  ;;  %v2401_v30 = vmul.f32 %v557_v19, %v494_v24  ;;  %v2407_v34 = vmul.f32 %v557_v19, %v526_v25 }
 0x18e   : > { %v497_v28 = vpop.f32.mrb[3].mxu0  ;;  %v529_v29 = vpop.f32.mrb[3].mxu1  ;;  %594 = vmax.xlane.f32.xlu0 %v2397_v23  ;;  %578 = vmax.xlane.f32.xlu1 %v2395_v22  ;;  %v2403_v31 = vmul.f32 %v1535_v26, %v557_v19  ;;  %v2409_v35 = vmul.f32 %v1543_v27, %v557_v19 }
 0x18f   : > { %v2413_v42 = vmul.f32 %v557_v19, %v497_v28  ;;  %v2415_v43 = vmul.f32 %v557_v19, %v529_v29 }
 0x190   : > { %2999 = vst [vmem:[#allocation19_spill] sm:$0xff] %v2409_v35 }
 0x192   : > { %580 = vmax.xlane.f32.xlu1 %v2403_v31  ;;  %574 = vmax.xlane.f32.xlu0 %v2401_v30 }
 0x193   : > { %v1538_v32 = vpop.f32.mrb[4].mxu0  ;;  %v1546_v33 = vpop.f32.mrb[4].mxu1 }
 0x194   : > { %v510_v36 = vpop.f32.mrb[5].mxu0  ;;  %v542_v37 = vpop.f32.mrb[5].mxu1  ;;  %v2419_v44 = vmul.f32 %v1538_v32, %v557_v19  ;;  %v2437_v50 = vmul.f32 %v1546_v33, %v557_v19 }
 0x195   : > { %v1539_v38 = vpop.f32.mrb[6].mxu0  ;;  %v1547_v39 = vpop.f32.mrb[6].mxu1  ;;  %v2425_v46 = vmul.f32 %v557_v19, %v510_v36  ;;  %v2431_v48 = vmul.f32 %v557_v19, %v542_v37 }
 0x196   : > { %v513_v40 = vpop.f32.mrb[7].mxu0  ;;  %v545_v41 = vpop.f32.mrb[7].mxu1  ;;  %596 = vmax.xlane.f32.xlu1 %v2409_v35  ;;  %590 = vmax.xlane.f32.xlu0 %v2407_v34  ;;  %v2421_v45 = vmul.f32 %v1539_v38, %v557_v19  ;;  %3002 = vst [vmem:[#allocation22_spill] sm:$0xff] %v2437_v50  ;;  %v2439_v51 = vmul.f32 %v1547_v39, %v557_v19 }
 0x197   : > { %v2427_v47 = vmul.f32 %v557_v19, %v513_v40  ;;  %3000 = vst [vmem:[#allocation20_spill] sm:$0xff] %v2431_v48  ;;  %v2433_v49 = vmul.f32 %v557_v19, %v545_v41 }
 0x198   : > { %3003 = vst [vmem:[#allocation23_spill] sm:$0xff] %v2439_v51 }
 0x199   : > { %3001 = vst [vmem:[#allocation21_spill] sm:$0xff] %v2433_v49 }
 0x19a   : > { %592 = vmax.xlane.f32.xlu1 %v2415_v43  ;;  %576 = vmax.xlane.f32.xlu0 %v2413_v42 }
 0x19e   : > { %588 = vmax.xlane.f32.xlu1 %v2421_v45  ;;  %586 = vmax.xlane.f32.xlu0 %v2419_v44 }
 0x1a2   : > { %584 = vmax.xlane.f32.xlu1 %v2427_v47  ;;  %582 = vmax.xlane.f32.xlu0 %v2425_v46 }
 0x1a6   : > { %600 = vmax.xlane.f32.xlu1 %v2433_v49  ;;  %598 = vmax.xlane.f32.xlu0 %v2431_v48 }
 0x1aa   : > { %604 = vmax.xlane.f32.xlu1 %v2439_v51  ;;  %602 = vmax.xlane.f32.xlu0 %v2437_v50 }
 0x21b   : > { %v2443_v52 = vpop.xlane.xlu0 %594  ;;  %v2445_v53 = vpop.xlane.xlu1 %578 }
 0x21f   : > { %v2447_v54 = vpop.xlane.xlu1 %580  ;;  %v2449_v55 = vpop.xlane.xlu0 %574 }
 0x223   : > { %v2451_v56 = vpop.xlane.xlu1 %596  ;;  %v2453_v57 = vpop.xlane.xlu0 %590 }
 0x227   : > { %v2455_v58 = vpop.xlane.xlu1 %592  ;;  %v2457_v59 = vpop.xlane.xlu0 %576 }
 0x22b   : > { %v2459_v60 = vpop.xlane.xlu1 %588  ;;  %v2461_v61 = vpop.xlane.xlu0 %586 }
 0x22c   : > { %v609_v2 = vmax.f32 %v2447_v54, %v2459_v60  ;;  %v608_v3 = vmax.f32 %v2445_v53, %v2461_v61 }
 0x22e   : > { %v613_v10 = vmax.f32 %v609_v2, %v2451_v56  ;;  %v612_v11 = vmax.f32 %v608_v3, %v2443_v52 }
 0x22f   : > { %v2463_v62 = vpop.xlane.xlu1 %584  ;;  %v2465_v63 = vpop.xlane.xlu0 %582 }
 0x230   : > { %v607_v0 = vmax.f32 %v2457_v59, %v2463_v62  ;;  %v606_v1 = vmax.f32 %v2449_v55, %v2465_v63 }
 0x232   : > { %v611_v4 = vmax.f32 %v607_v0, %v2455_v58  ;;  %v610_v5 = vmax.f32 %v606_v1, %v2453_v57 }
 0x233   : > { %v2477_v6 = vpop.xlane.xlu1 %600  ;;  %v2479_v7 = vpop.xlane.xlu0 %598 }
 0x234   : > { %v615_v8 = vmax.f32 %v611_v4, %v2477_v6  ;;  %v614_v9 = vmax.f32 %v610_v5, %v2479_v7 }
 0x236   : > { %v618_v16 = vmax.f32 %v614_v9, %v615_v8 }
 0x237   : > { %v2485_v12 = vpop.xlane.xlu1 %604  ;;  %v2487_v13 = vpop.xlane.xlu0 %602 }
 0x238   : > { %v617_v14 = vmax.f32 %v613_v10, %v2485_v12  ;;  %v616_v15 = vmax.f32 %v612_v11, %v2487_v13 }
 0x23a   : > { %v619_v17 = vmax.f32 %v616_v15, %v617_v14 }
 0x23c   : > { %v620_v18 = vmax.f32 %v618_v16, %v619_v17 }
 0x23e   : > { %v621_v19 = vrot.slane %v620_v18, 4 }
 0x240   : > { %v622_v20 = vmax.f32 %v620_v18, %v621_v19 }
 0x242   : > { %v623_v21 = vrot.slane %v622_v20, 2 }
 0x244   : > { %v624_v24 = vmax.f32 %v622_v20, %v623_v21 }
 0x246   : > { %v625_v25 = vrot.slane %v624_v24, 1 }
 0x248   : > { %v626_v26 = vmax.f32 %v624_v24, %v625_v25 }
 0x24a   : > { %1566 = vpush %v626_v26 }
 0x27b   : > { %s1567_s13 = spop %1566 }
 0x27c   : > { %v2491_v27 = vstv %s1567_s13 }
 0x27d   : > { %v630_v28 = vsub.f32 %v2413_v42, %v2491_v27  ;;  %v629_v29 = vsub.f32 %v2401_v30, %v2491_v27  ;;  %v632_v32 = vsub.f32 %v2403_v31, %v2491_v27  ;;  %v631_v33 = vsub.f32 %v2395_v22, %v2491_v27 }
 0x27e   : > { %v633_v39 = vsub.f32 %v2425_v46, %v2491_v27  ;;  %v634_v41 = vsub.f32 %v2427_v47, %v2491_v27  ;;  %v635_v1 = vsub.f32 %v2419_v44, %v2491_v27  ;;  %v636_v3 = vsub.f32 %v2421_v45, %v2491_v27 }
 0x27f   : > { %v647_v36 = vmul.f32 1.442695, %v630_v28  ;;  %v645_v37 = vmul.f32 1.442695, %v629_v29  ;;  %v649_v38 = vmul.f32 1.442695, %v631_v33  ;;  %v637_v5 = vsub.f32 %v2407_v34, %v2491_v27 }
 0x280   : > { %v651_v40 = vmul.f32 1.442695, %v632_v32  ;;  %v653_v0 = vmul.f32 1.442695, %v633_v39  ;;  %v655_v2 = vmul.f32 1.442695, %v634_v41  ;;  %v638_v9 = vsub.f32 %v2415_v43, %v2491_v27 }
 0x281   : > { %1721 = vpow2.f32 %v647_v36  ;;  %v657_v4 = vmul.f32 1.442695, %v635_v1  ;;  %v659_v8 = vmul.f32 1.442695, %v636_v3  ;;  %v661_v14 = vmul.f32 1.442695, %v637_v5 }
 0x282   : > { %1723 = vpow2.f32 %v645_v37  ;;  %v639_v15 = vsub.f32 %v2397_v23, %v2491_v27  ;;  %v663_v17 = vmul.f32 1.442695, %v638_v9  ;;  %v640_v18 = vsub.f32 %v2409_v35, %v2491_v27 }
 0x283   : > { %1725 = vpow2.f32 %v649_v38  ;;  %v641_v25 = vsub.f32 %v2431_v48, %v2491_v27  ;;  %v642_v29 = vsub.f32 %v2433_v49, %v2491_v27  ;;  %v643_v38 = vsub.f32 %v2437_v50, %v2491_v27 }
 0x284   : > { %1727 = vpow2.f32 %v651_v40  ;;  %v665_v24 = vmul.f32 1.442695, %v639_v15  ;;  %v667_v28 = vmul.f32 1.442695, %v640_v18  ;;  %v644_v41 = vsub.f32 %v2439_v51, %v2491_v27 }
 0x285   : > { %1729 = vpow2.f32 %v653_v0  ;;  %v669_v37 = vmul.f32 1.442695, %v641_v25  ;;  %v671_v40 = vmul.f32 1.442695, %v642_v29  ;;  %v673_v3 = vmul.f32 1.442695, %v643_v38 }
 0x286   : > { %1731 = vpow2.f32 %v655_v2  ;;  %v675_v5 = vmul.f32 1.442695, %v644_v41 }
 0x287   : > { %1733 = vpow2.f32 %v657_v4 }
 0x288   : > { %1735 = vpow2.f32 %v659_v8 }
 0x289   : > { %1737 = vpow2.f32 %v661_v14 }
 0x28a   : > { %1739 = vpow2.f32 %v663_v17 }
 0x28b   : > { %v1722_v10 = vpop.eup %1721  ;;  %1741 = vpow2.f32 %v665_v24 }
 0x28c   : > { %v1724_v11 = vpop.eup %1723  ;;  %679 = vadd.xlane.f32.xlu1 %v1722_v10  ;;  %1743 = vpow2.f32 %v667_v28 }
 0x28d   : > { %677 = vadd.xlane.f32.xlu0 %v1724_v11  ;;  %v709_v16 = vadd.f32 %v1724_v11, %v1722_v10  ;;  %v1726_v19 = vpop.eup %1725  ;;  %1745 = vpow2.f32 %v669_v37 }
 0x28e   : > { %v1728_v20 = vpop.eup %1727  ;;  %1747 = vpow2.f32 %v671_v40 }
 0x28f   : > { %v710_v21 = vadd.f32 %v1726_v19, %v709_v16  ;;  %v1730_v32 = vpop.eup %1729  ;;  %1749 = vpow2.f32 %v673_v3 }
 0x290   : > { %683 = vadd.xlane.f32.xlu1 %v1728_v20  ;;  %v1732_v33 = vpop.eup %1731  ;;  %1751 = vpow2.f32 %v675_v5 }
 0x291   : > { %681 = vadd.xlane.f32.xlu0 %v1726_v19  ;;  %v711_v26 = vadd.f32 %v1728_v20, %v710_v21  ;;  %v1734_v0 = vpop.eup %1733 }
 0x292   : > { %v1736_v1 = vpop.eup %1735 }
 0x293   : > { %v712_v36 = vadd.f32 %v1730_v32, %v711_v26  ;;  %v1738_v8 = vpop.eup %1737 }
 0x294   : > { %687 = vadd.xlane.f32.xlu1 %v1732_v33  ;;  %v1740_v9 = vpop.eup %1739 }
 0x295   : > { %685 = vadd.xlane.f32.xlu0 %v1730_v32  ;;  %v713_v39 = vadd.f32 %v1732_v33, %v712_v36  ;;  %v1742_v14 = vpop.eup %1741 }
 0x296   : > { %v1744_v15 = vpop.eup %1743 }
 0x297   : > { %v714_v2 = vadd.f32 %v1734_v0, %v713_v39  ;;  %v1746_v18 = vpop.eup %1745 }
 0x298   : > { %691 = vadd.xlane.f32.xlu1 %v1736_v1  ;;  %v1748_v19 = vpop.eup %1747 }
 0x299   : > { %689 = vadd.xlane.f32.xlu0 %v1734_v0  ;;  %v715_v4 = vadd.f32 %v1736_v1, %v714_v2  ;;  %v1750_v24 = vpop.eup %1749 }
 0x29a   : > { %v1752_v25 = vpop.eup %1751 }
 0x29b   : > { %v716_v10 = vadd.f32 %v1738_v8, %v715_v4 }
 0x29c   : > { %695 = vadd.xlane.f32.xlu1 %v1740_v9 }
 0x29d   : > { %693 = vadd.xlane.f32.xlu0 %v1738_v8  ;;  %v717_v11 = vadd.f32 %v1740_v9, %v716_v10 }
 0x29f   : > { %v718_v16 = vadd.f32 %v1742_v14, %v717_v11 }
 0x2a0   : > { %699 = vadd.xlane.f32.xlu1 %v1744_v15 }
 0x2a1   : > { %697 = vadd.xlane.f32.xlu0 %v1742_v14  ;;  %v719_v17 = vadd.f32 %v1744_v15, %v718_v16 }
 0x2a3   : > { %v720_v20 = vadd.f32 %v1746_v18, %v719_v17 }
 0x2a4   : > { %703 = vadd.xlane.f32.xlu1 %v1748_v19 }
 0x2a5   : > { %701 = vadd.xlane.f32.xlu0 %v1746_v18  ;;  %v721_v21 = vadd.f32 %v1748_v19, %v720_v20  ;;  %v2067_v20 = vmov (!%p1490_p6), -inf  }
 0x2a6   : > { %739 = vst.msk [vmem:[#allocation2] sm:$0xff] (!%p1490_p6), %vm738_vm0, %v2067_v20  ;;  %740 = vst.msk [vmem:[#allocation2 + $0x8] sm:$0xff] (!%p1490_p6), %vm738_vm0, %v2067_v20 }
 0x2a7   : > { %v722_v26 = vadd.f32 %v1750_v24, %v721_v21  ;;  %741 = vst.msk [vmem:[#allocation2 + $0x10] sm:$0xff] (!%p1490_p6), %vm738_vm0, %v2067_v20  ;;  %742 = vst.msk [vmem:[#allocation2 + $0x18] sm:$0xff] (!%p1490_p6), %vm738_vm0, %v2067_v20  ;;  %v2068_v21 = vmov (!%p1490_p6), 0.0  }
 0x2a8   : > { %707 = vadd.xlane.f32.xlu1 %v1752_v25  ;;  %743 = vst.msk [vmem:[#allocation2 + $0x20] sm:$0xff] (!%p1490_p6), %vm738_vm0, %v2067_v20  ;;  %744 = vst.msk [vmem:[#allocation2 + $0x28] sm:$0xff] (!%p1490_p6), %vm738_vm0, %v2067_v20 }
 0x2a9   : > { %705 = vadd.xlane.f32.xlu0 %v1750_v24  ;;  %v723_v28 = vadd.f32 %v1752_v25, %v722_v26  ;;  %745 = vst.msk [vmem:[#allocation2 + $0x30] sm:$0xff] (!%p1490_p6), %vm738_vm0, %v2067_v20  ;;  %746 = vst.msk [vmem:[#allocation2 + $0x38] sm:$0xff] (!%p1490_p6), %vm738_vm0, %v2067_v20 }
 0x2aa   : > { %747 = vst.msk [vmem:[#allocation2 + $0x40] sm:$0xff] (!%p1490_p6), %vm738_vm0, %v2067_v20  ;;  %748 = vst.msk [vmem:[#allocation2 + $0x48] sm:$0xff] (!%p1490_p6), %vm738_vm0, %v2067_v20 }
 0x2ab   : > { %v724_v29 = vrot.slane %v723_v28, 4  ;;  %749 = vst.msk [vmem:[#allocation2 + $0x50] sm:$0xff] (!%p1490_p6), %vm738_vm0, %v2067_v20  ;;  %750 = vst.msk [vmem:[#allocation2 + $0x58] sm:$0xff] (!%p1490_p6), %vm738_vm0, %v2067_v20 }
 0x2ac   : > { %751 = vst.msk [vmem:[#allocation2 + $0x60] sm:$0xff] (!%p1490_p6), %vm738_vm0, %v2067_v20  ;;  %752 = vst.msk [vmem:[#allocation2 + $0x68] sm:$0xff] (!%p1490_p6), %vm738_vm0, %v2067_v20 }
 0x2ad   : > { %v725_v32 = vadd.f32 %v724_v29, %v723_v28  ;;  %753 = vst.msk [vmem:[#allocation2 + $0x70] sm:$0xff] (!%p1490_p6), %vm738_vm0, %v2067_v20  ;;  %754 = vst.msk [vmem:[#allocation2 + $0x78] sm:$0xff] (!%p1490_p6), %vm738_vm0, %v2067_v20 }
 0x2ae   : > { %755 = vst.msk [vmem:[#allocation3] sm:$0xff] (!%p1490_p6), %vm738_vm0, %v2068_v21  ;;  %756 = vst.msk [vmem:[#allocation3 + $0x8] sm:$0xff] (!%p1490_p6), %vm738_vm0, %v2068_v21 }
 0x2af   : > { %v726_v33 = vrot.slane %v725_v32, 2  ;;  %757 = vst.msk [vmem:[#allocation3 + $0x10] sm:$0xff] (!%p1490_p6), %vm738_vm0, %v2068_v21  ;;  %758 = vst.msk [vmem:[#allocation3 + $0x18] sm:$0xff] (!%p1490_p6), %vm738_vm0, %v2068_v21 }
 0x2b0   : > { %759 = vst.msk [vmem:[#allocation3 + $0x20] sm:$0xff] (!%p1490_p6), %vm738_vm0, %v2068_v21  ;;  %760 = vst.msk [vmem:[#allocation3 + $0x28] sm:$0xff] (!%p1490_p6), %vm738_vm0, %v2068_v21 }
 0x2b1   : > { %v727_v36 = vadd.f32 %v726_v33, %v725_v32  ;;  %761 = vst.msk [vmem:[#allocation3 + $0x30] sm:$0xff] (!%p1490_p6), %vm738_vm0, %v2068_v21  ;;  %762 = vst.msk [vmem:[#allocation3 + $0x38] sm:$0xff] (!%p1490_p6), %vm738_vm0, %v2068_v21 }
 0x2b2   : > { %763 = vst.msk [vmem:[#allocation3 + $0x40] sm:$0xff] (!%p1490_p6), %vm738_vm0, %v2068_v21  ;;  %764 = vst.msk [vmem:[#allocation3 + $0x48] sm:$0xff] (!%p1490_p6), %vm738_vm0, %v2068_v21 }
 0x2b3   : > { %v728_v37 = vrot.slane %v727_v36, 1  ;;  %765 = vst.msk [vmem:[#allocation3 + $0x50] sm:$0xff] (!%p1490_p6), %vm738_vm0, %v2068_v21  ;;  %766 = vst.msk [vmem:[#allocation3 + $0x58] sm:$0xff] (!%p1490_p6), %vm738_vm0, %v2068_v21 }
 0x2b4   : > { %767 = vst.msk [vmem:[#allocation3 + $0x60] sm:$0xff] (!%p1490_p6), %vm738_vm0, %v2068_v21  ;;  %768 = vst.msk [vmem:[#allocation3 + $0x68] sm:$0xff] (!%p1490_p6), %vm738_vm0, %v2068_v21 }
 0x2b5   : > { %v729_v38 = vadd.f32 %v728_v37, %v727_v36  ;;  %769 = vst.msk [vmem:[#allocation3 + $0x70] sm:$0xff] (!%p1490_p6), %vm738_vm0, %v2068_v21  ;;  %770 = vst.msk [vmem:[#allocation3 + $0x78] sm:$0xff] (!%p1490_p6), %vm738_vm0, %v2068_v21 }
 0x2b6   : > { %771 = vst.msk [vmem:[%s2377_s23] sm:$0xff] (!%p1490_p6), %vm738_vm0, %v2068_v21  ;;  %772 = vst.msk [vmem:[%s2377_s23 + $0x8] sm:$0xff] (!%p1490_p6), %vm738_vm0, %v2068_v21 }
 0x2b7   : > { %1753 = vlog2.f32 %v729_v38  ;;  %773 = vst.msk [vmem:[%s2377_s23 + $0x10] sm:$0xff] (!%p1490_p6), %vm738_vm0, %v2068_v21  ;;  %774 = vst.msk [vmem:[%s2377_s23 + $0x18] sm:$0xff] (!%p1490_p6), %vm738_vm0, %v2068_v21 }
 0x2b8   : > { %775 = vst.msk [vmem:[%s2377_s23 + $0x20] sm:$0xff] (!%p1490_p6), %vm738_vm0, %v2068_v21  ;;  %776 = vst.msk [vmem:[%s2377_s23 + $0x28] sm:$0xff] (!%p1490_p6), %vm738_vm0, %v2068_v21 }
 0x2b9   : > { %777 = vst.msk [vmem:[%s2377_s23 + $0x30] sm:$0xff] (!%p1490_p6), %vm738_vm0, %v2068_v21  ;;  %778 = vst.msk [vmem:[%s2377_s23 + $0x38] sm:$0xff] (!%p1490_p6), %vm738_vm0, %v2068_v21 }
 0x2ba   : > { %779 = vst.msk [vmem:[%s2377_s23 + $0x40] sm:$0xff] (!%p1490_p6), %vm738_vm0, %v2068_v21  ;;  %780 = vst.msk [vmem:[%s2377_s23 + $0x48] sm:$0xff] (!%p1490_p6), %vm738_vm0, %v2068_v21 }
 0x2bb   : > { %781 = vst.msk [vmem:[%s2377_s23 + $0x50] sm:$0xff] (!%p1490_p6), %vm738_vm0, %v2068_v21  ;;  %782 = vst.msk [vmem:[%s2377_s23 + $0x58] sm:$0xff] (!%p1490_p6), %vm738_vm0, %v2068_v21 }
 0x2bc   : > { %783 = vst.msk [vmem:[%s2377_s23 + $0x60] sm:$0xff] (!%p1490_p6), %vm738_vm0, %v2068_v21  ;;  %784 = vst.msk [vmem:[%s2377_s23 + $0x68] sm:$0xff] (!%p1490_p6), %vm738_vm0, %v2068_v21 }
 0x2bd   : > { %785 = vst.msk [vmem:[%s2377_s23 + $0x70] sm:$0xff] (!%p1490_p6), %vm738_vm0, %v2068_v21  ;;  %786 = vst.msk [vmem:[%s2377_s23 + $0x78] sm:$0xff] (!%p1490_p6), %vm738_vm0, %v2068_v21 }
 0x2c1   : > { %v1754_v39 = vpop.eup %1753 }
 0x2c2   : > { %v731_v40 = vmul.f32 0.6931472, %v1754_v39 }
 0x2c4   : > { %v732_v41 = vadd.f32 %v731_v40, %v2491_v27 }
 0x2c6   : > { %733 = vst [vmem:[%s2529_s16] sm:$0x1] %v732_v41 }
 0x319   : > { %v2532_v0 = vpop.xlane.xlu1 %679 }
 0x31a   : > { %v2534_v1 = vpop.xlane.xlu0 %677 }
 0x31d   : > { %v2536_v2 = vpop.xlane.xlu1 %683 }
 0x31e   : > { %v2538_v3 = vpop.xlane.xlu0 %681 }
 0x321   : > { %v2540_v4 = vpop.xlane.xlu1 %687 }
 0x322   : > { %v2542_v5 = vpop.xlane.xlu0 %685 }
 0x325   : > { %v2544_v8 = vpop.xlane.xlu1 %691 }
 0x326   : > { %v2546_v9 = vpop.xlane.xlu0 %689 }
 0x329   : > { %v2548_v10 = vpop.xlane.xlu1 %695 }
 0x32a   : > { %v2550_v11 = vpop.xlane.xlu0 %693 }
 0x32d   : > { %v2552_v14 = vpop.xlane.xlu1 %699 }
 0x32e   : > { %v2554_v15 = vpop.xlane.xlu0 %697 }
 0x330   : > { %737 = sbr.rel (%p1490_p6) target bundleno = 823 (0x337), region = 44 }
 0x331   : > { %v2556_v16 = vpop.xlane.xlu1 %703 }
 0x332   : > { %v2558_v17 = vpop.xlane.xlu0 %701 }
 0x335   : > { %v2560_v18 = vpop.xlane.xlu1 %707 }
 0x336   : > { %v2562_v19 = vpop.xlane.xlu0 %705 }
 0x337 PF: > { %v787_v24 = vld [vmem:[#allocation2] sm:$0xff]  ;;  %s3005_s14 = sld [smem:[#allocation14_spill]]  ;;  %vm979_vm1 = vcmask 7168   ;;  %v788_v25 = vld [vmem:[#allocation2 + $0x8] sm:$0xff]  ;;  %s2630_s12 = sshll.u32 %s2049_s29, 7  ;;  %v789_v29 = vld [vmem:[#allocation2 + $0x10] sm:$0xff] }
 0x338   : > { %v803_v26 = vmax.f32 %v787_v24, %v2449_v55  ;;  %v804_v28 = vmax.f32 %v788_v25, %v2457_v59  ;;  %s1016_s11 = sadd.s32 128, %s2630_s12  ;;  %v805_v32 = vmax.f32 %v789_v29, %v2445_v53  ;;  %v790_v33 = vld [vmem:[#allocation2 + $0x18] sm:$0xff]  ;;  %v791_v36 = vld [vmem:[#allocation2 + $0x20] sm:$0xff]  ;;  %v792_v38 = vld [vmem:[#allocation2 + $0x28] sm:$0xff] }
 0x339   : > { %v806_v41 = vmax.f32 %v790_v33, %v2447_v54  ;;  %v807_v20 = vmax.f32 %v791_v36, %v2465_v63 }
 0x33a   : > { %v835_v55 = vsub.f32 %v787_v24, %v803_v26  ;;  %v899_v59 = vsub.f32 %v2491_v27, %v803_v26  ;;  %996 = vst.msk [vmem:[#allocation2] sm:$0xff] %vm979_vm1, %v803_v26  ;;  %v836_v37 = vsub.f32 %v788_v25, %v804_v28  ;;  %v900_v53 = vsub.f32 %v2491_v27, %v804_v28 }
 0x33b   : > { %997 = vst.msk [vmem:[#allocation2 + $0x8] sm:$0xff] %vm979_vm1, %v804_v28  ;;  %v837_v39 = vsub.f32 %v789_v29, %v805_v32  ;;  %v901_v40 = vsub.f32 %v2491_v27, %v805_v32  ;;  %998 = vst.msk [vmem:[#allocation2 + $0x10] sm:$0xff] %vm979_vm1, %v805_v32  ;;  %v808_v26 = vmax.f32 %v792_v38, %v2463_v62 }
 0x33c   : > { %v851_v21 = vmul.f32 1.442695, %v835_v55  ;;  %v915_v24 = vmul.f32 1.442695, %v899_v59  ;;  %v853_v25 = vmul.f32 1.442695, %v836_v37  ;;  %v838_v29 = vsub.f32 %v790_v33, %v806_v41 }
 0x33d   : > { %s2633_s8 = sshll.u32 %s3005_s14, 7  ;;  %v917_v51 = vmul.f32 1.442695, %v900_v53  ;;  %v855_v28 = vmul.f32 1.442695, %v837_v39  ;;  %999 = vst.msk [vmem:[#allocation2 + $0x18] sm:$0xff] %vm979_vm1, %v806_v41  ;;  %v902_v54 = vsub.f32 %v2491_v27, %v806_v41  ;;  %v839_v63 = vsub.f32 %v791_v36, %v807_v20 }
 0x33e   : > { %s1014_s6 = sadd.s32 128, %s2633_s8  ;;  %p2646_p12 = scmp.lt.s32.totalorder %s2633_s8, %s1016_s11  ;;  %v919_v50 = vmul.f32 1.442695, %v901_v40  ;;  %1000 = vst.msk [vmem:[#allocation2 + $0x20] sm:$0xff] %vm979_vm1, %v807_v20  ;;  %1755 = vpow2.f32 %v851_v21  ;;  %v903_v32 = vsub.f32 %v2491_v27, %v807_v20  ;;  %1001 = vst.msk [vmem:[#allocation2 + $0x28] sm:$0xff] %vm979_vm1, %v808_v26  ;;  %v793_v55 = vld [vmem:[#allocation2 + $0x30] sm:$0xff]  ;;  %v840_v37 = vsub.f32 %v792_v38, %v808_v26 }
 0x33f   : > { %p2641_p4 = scmp.lt.s32.totalorder %s2630_s12, %s1014_s6  ;;  %v794_v59 = vld [vmem:[#allocation2 + $0x38] sm:$0xff]  ;;  %1757 = vpow2.f32 %v915_v24  ;;  %v857_v62 = vmul.f32 1.442695, %v838_v29  ;;  %v904_v53 = vsub.f32 %v2491_v27, %v808_v26  ;;  %v795_v33 = vld [vmem:[#allocation2 + $0x40] sm:$0xff]  ;;  %v796_v39 = vld [vmem:[#allocation2 + $0x48] sm:$0xff]  ;;  %v809_v20 = vmax.f32 %v793_v55, %v2461_v61 }
 0x340   : > { %v797_v40 = vld [vmem:[#allocation2 + $0x50] sm:$0xff]  ;;  %1759 = vpow2.f32 %v853_v25  ;;  %v921_v49 = vmul.f32 1.442695, %v902_v54  ;;  %v859_v21 = vmul.f32 1.442695, %v839_v63  ;;  %v810_v35 = vmax.f32 %v794_v59, %v2459_v60 }
 0x341   : > { %p1018_p3 = pnand %p2646_p12, %p2641_p4  ;;  %v923_v48 = vmul.f32 1.442695, %v903_v32  ;;  %1761 = vpow2.f32 %v917_v51  ;;  %v861_v36 = vmul.f32 1.442695, %v840_v37  ;;  %v925_v41 = vmul.f32 1.442695, %v904_v53 }
 0x342   : > { %1763 = vpow2.f32 %v855_v28  ;;  %v811_v24 = vmax.f32 %v795_v33, %v2453_v57  ;;  %v812_v38 = vmax.f32 %v796_v39, %v2455_v58  ;;  %v841_v26 = vsub.f32 %v793_v55, %v809_v20  ;;  %1002 = vst.msk [vmem:[#allocation2 + $0x30] sm:$0xff] %vm979_vm1, %v809_v20  ;;  %1003 = vst.msk [vmem:[#allocation2 + $0x38] sm:$0xff] %vm979_vm1, %v810_v35  ;;  %v819_v57 = vld [vmem:[#allocation3] sm:$0xff]  ;;  %v820_v37 = vld [vmem:[#allocation3 + $0x8] sm:$0xff] }
 0x343   : > { %1765 = vpow2.f32 %v919_v50  ;;  %v905_v29 = vsub.f32 %v2491_v27, %v809_v20  ;;  %v813_v25 = vmax.f32 %v797_v40, %v2443_v52  ;;  %v842_v51 = vsub.f32 %v794_v59, %v810_v35  ;;  %v798_v52 = vld [vmem:[#allocation2 + $0x58] sm:$0xff] }
 0x344   : > { %1767 = vpow2.f32 %v857_v62  ;;  %v906_v54 = vsub.f32 %v2491_v27, %v810_v35  ;;  %v843_v61 = vsub.f32 %v795_v33, %v811_v24  ;;  %1004 = vst.msk [vmem:[#allocation2 + $0x40] sm:$0xff] %vm979_vm1, %v811_v24  ;;  %1005 = vst.msk [vmem:[#allocation2 + $0x48] sm:$0xff] %vm979_vm1, %v812_v38  ;;  %v863_v50 = vmul.f32 1.442695, %v841_v26 }
 0x345   : > { %1769 = vpow2.f32 %v921_v49  ;;  %v927_v58 = vmul.f32 1.442695, %v905_v29  ;;  %v907_v60 = vsub.f32 %v2491_v27, %v811_v24  ;;  %1006 = vst.msk [vmem:[#allocation2 + $0x50] sm:$0xff] %vm979_vm1, %v813_v25  ;;  %v865_v28 = vmul.f32 1.442695, %v842_v51  ;;  %v799_v29 = vld [vmem:[#allocation2 + $0x60] sm:$0xff] }
 0x346   : > { %1771 = vpow2.f32 %v859_v21  ;;  %v929_v63 = vmul.f32 1.442695, %v906_v54  ;;  %v867_v32 = vmul.f32 1.442695, %v843_v61  ;;  %v844_v55 = vsub.f32 %v796_v39, %v812_v38  ;;  %v821_v39 = vld [vmem:[#allocation3 + $0x10] sm:$0xff] }
 0x347   : > { %1773 = vpow2.f32 %v923_v48  ;;  %v931_v35 = vmul.f32 1.442695, %v907_v60  ;;  %v908_v59 = vsub.f32 %v2491_v27, %v812_v38  ;;  %v845_v49 = vsub.f32 %v797_v40, %v813_v25  ;;  %v822_v60 = vld [vmem:[#allocation3 + $0x18] sm:$0xff] }
 0x348   : > { %v1756_v62 = vpop.eup %1755  ;;  %1775 = vpow2.f32 %v861_v36  ;;  %v909_v53 = vsub.f32 %v2491_v27, %v813_v25  ;;  %v814_v33 = vmax.f32 %v798_v52, %v2451_v56  ;;  %v869_v21 = vmul.f32 1.442695, %v844_v55  ;;  %v800_v55 = vld [vmem:[#allocation2 + $0x68] sm:$0xff] }
 0x349   : > { %v1758_v20 = vpop.eup %1757  ;;  %v883_v24 = vmul.f32 %v1756_v62, %v819_v57  ;;  %1777 = vpow2.f32 %v925_v41  ;;  %v933_v26 = vmul.f32 1.442695, %v908_v59  ;;  %v871_v38 = vmul.f32 1.442695, %v845_v49 }
 0x34a   : > { %v1760_v51 = vpop.eup %1759  ;;  %v947_v48 = vmul.f32 %v1758_v20, %v2534_v1  ;;  %1779 = vpow2.f32 %v863_v50  ;;  %v935_v54 = vmul.f32 1.442695, %v909_v53  ;;  %1007 = vst.msk [vmem:[#allocation2 + $0x58] sm:$0xff] %vm979_vm1, %v814_v33  ;;  %v846_v25 = vsub.f32 %v798_v52, %v814_v33 }
 0x34b   : > { %v1762_v40 = vpop.eup %1761  ;;  %v884_v36 = vmul.f32 %v1760_v51, %v820_v37  ;;  %1781 = vpow2.f32 %v927_v58  ;;  %v910_v56 = vsub.f32 %v2491_v27, %v814_v33  ;;  %v815_v1 = vmax.f32 %v799_v29, %v2479_v7  ;;  %v823_v37 = vld [vmem:[#allocation3 + $0x20] sm:$0xff] }
 0x34c   : > { %v1764_v61 = vpop.eup %1763  ;;  %v963_v41 = vadd.f32 %v947_v48, %v883_v24  ;;  %v948_v57 = vmul.f32 %v1762_v40, %v2532_v0  ;;  %1783 = vpow2.f32 %v865_v28  ;;  %v873_v62 = vmul.f32 1.442695, %v846_v25  ;;  %v824_v48 = vld [vmem:[#allocation3 + $0x28] sm:$0xff] }
 0x34d   : > { %v1766_v50 = vpop.eup %1765  ;;  %v885_v59 = vmul.f32 %v1764_v61, %v821_v39  ;;  %1785 = vpow2.f32 %v929_v63  ;;  %v937_v49 = vmul.f32 1.442695, %v910_v56  ;;  %v847_v33 = vsub.f32 %v799_v29, %v815_v1  ;;  %1008 = vst.msk [vmem:[#allocation2 + $0x60] sm:$0xff] %vm979_vm1, %v815_v1  ;;  %v825_v56 = vld [vmem:[#allocation3 + $0x30] sm:$0xff] }
 0x34e   : > { %v1768_v53 = vpop.eup %1767  ;;  %980 = vst.msk [vmem:[#allocation3] sm:$0xff] %vm979_vm1, %v963_v41  ;;  %v964_v58 = vadd.f32 %v948_v57, %v884_v36  ;;  %v949_v52 = vmul.f32 %v1766_v50, %v2538_v3  ;;  %1787 = vpow2.f32 %v867_v32  ;;  %v911_v7 = vsub.f32 %v2491_v27, %v815_v1  ;;  %v801_v32 = vld [vmem:[#allocation2 + $0x70] sm:$0xff]  ;;  %v802_v57 = vld [vmem:[#allocation2 + $0x78] sm:$0xff] }
 0x34f   : > { %v1770_v0 = vpop.eup %1769  ;;  %v886_v28 = vmul.f32 %v1768_v53, %v822_v60  ;;  %1789 = vpow2.f32 %v931_v35  ;;  %v816_v63 = vmax.f32 %v800_v55, %v2477_v6  ;;  %v875_v3 = vmul.f32 1.442695, %v847_v33  ;;  %v826_v50 = vld [vmem:[#allocation3 + $0x38] sm:$0xff] }
 0x350   : > { %v1772_v20 = vpop.eup %1771  ;;  %981 = vst.msk [vmem:[#allocation3 + $0x8] sm:$0xff] %vm979_vm1, %v964_v58  ;;  %v965_v24 = vadd.f32 %v949_v52, %v885_v59  ;;  %v950_v51 = vmul.f32 %v1770_v0, %v2536_v2  ;;  %1791 = vpow2.f32 %v869_v21  ;;  %v939_v40 = vmul.f32 1.442695, %v911_v7 }
 0x351   : > { %v1774_v29 = vpop.eup %1773  ;;  %v887_v39 = vmul.f32 %v1772_v20, %v823_v37  ;;  %1793 = vpow2.f32 %v933_v26  ;;  %v848_v36 = vsub.f32 %v800_v55, %v816_v63  ;;  %1009 = vst.msk [vmem:[#allocation2 + $0x68] sm:$0xff] %vm979_vm1, %v816_v63  ;;  %v912_v2 = vsub.f32 %v2491_v27, %v816_v63  ;;  %v827_v37 = vld [vmem:[#allocation3 + $0x40] sm:$0xff]  ;;  %v828_v20 = vld [vmem:[#allocation3 + $0x48] sm:$0xff] }
 0x352   : > { %v1776_v35 = vpop.eup %1775  ;;  %982 = vst.msk [vmem:[#allocation3 + $0x10] sm:$0xff] %vm979_vm1, %v965_v24  ;;  %v966_v6 = vadd.f32 %v950_v51, %v886_v28  ;;  %v951_v25 = vmul.f32 %v1774_v29, %v2542_v5  ;;  %1795 = vpow2.f32 %v871_v38  ;;  %v817_v26 = vmax.f32 %v801_v32, %v2487_v13  ;;  %v829_v29 = vld [vmem:[#allocation3 + $0x50] sm:$0xff] }
 0x353   : > { %v1778_v21 = vpop.eup %1777  ;;  %v888_v61 = vmul.f32 %v1776_v35, %v824_v48  ;;  %1797 = vpow2.f32 %v935_v54  ;;  %v877_v41 = vmul.f32 1.442695, %v848_v36  ;;  %v941_v5 = vmul.f32 1.442695, %v912_v2 }
 0x354   : > { %v1780_v60 = vpop.eup %1779  ;;  %983 = vst.msk [vmem:[#allocation3 + $0x18] sm:$0xff] %vm979_vm1, %v966_v6  ;;  %v967_v1 = vadd.f32 %v951_v25, %v887_v39  ;;  %v952_v55 = vmul.f32 %v1778_v21, %v2540_v4  ;;  %1799 = vpow2.f32 %v873_v62  ;;  %v849_v53 = vsub.f32 %v801_v32, %v817_v26  ;;  %1010 = vst.msk [vmem:[#allocation2 + $0x70] sm:$0xff] %vm979_vm1, %v817_v26 }
 0x355   : > { %v1782_v59 = vpop.eup %1781  ;;  %v889_v38 = vmul.f32 %v1780_v60, %v825_v56  ;;  %1801 = vpow2.f32 %v937_v49  ;;  %v913_v58 = vsub.f32 %v2491_v27, %v817_v26  ;;  %v818_v4 = vmax.f32 %v802_v57, %v2485_v12 }
 0x356   : > { %v1784_v54 = vpop.eup %1783  ;;  %984 = vst.msk [vmem:[#allocation3 + $0x20] sm:$0xff] %vm979_vm1, %v967_v1  ;;  %v968_v13 = vadd.f32 %v952_v55, %v888_v61  ;;  %v953_v52 = vmul.f32 %v1782_v59, %v2546_v9  ;;  %1803 = vpow2.f32 %v875_v3  ;;  %v879_v0 = vmul.f32 1.442695, %v849_v53  ;;  %v832_v55 = vld [vmem:[#allocation3 + $0x68] sm:$0xff] }
 0x357   : > { %v1786_v62 = vpop.eup %1785  ;;  %v890_v33 = vmul.f32 %v1784_v54, %v826_v50  ;;  %1805 = vpow2.f32 %v939_v40  ;;  %v943_v49 = vmul.f32 1.442695, %v913_v58  ;;  %v850_v24 = vsub.f32 %v802_v57, %v818_v4  ;;  %1011 = vst.msk [vmem:[#allocation2 + $0x78] sm:$0xff] %vm979_vm1, %v818_v4  ;;  %v833_v58 = vld [vmem:[#allocation3 + $0x70] sm:$0xff] }
 0x358   : > { %v1788_v28 = vpop.eup %1787  ;;  %985 = vst.msk [vmem:[#allocation3 + $0x28] sm:$0xff] %vm979_vm1, %v968_v13  ;;  %v969_v7 = vadd.f32 %v953_v52, %v889_v38  ;;  %v954_v63 = vmul.f32 %v1786_v62, %v2544_v8  ;;  %1807 = vpow2.f32 %v877_v41  ;;  %v914_v12 = vsub.f32 %v2491_v27, %v818_v4  ;;  %v830_v27 = vld [vmem:[#allocation3 + $0x58] sm:$0xff]  ;;  %v831_v41 = vld [vmem:[#allocation3 + $0x60] sm:$0xff] }
 0x359   : > { %v1790_v9 = vpop.eup %1789  ;;  %v891_v51 = vmul.f32 %v1788_v28, %v827_v37  ;;  %1809 = vpow2.f32 %v941_v5  ;;  %v881_v39 = vmul.f32 1.442695, %v850_v24  ;;  %v834_v4 = vld [vmem:[#allocation3 + $0x78] sm:$0xff]  ;;  %v1058_v24 = vstv (!%p1018_p3), %s2633_s8 }
 0x35a   : > { %v1792_v48 = vpop.eup %1791  ;;  %986 = vst.msk [vmem:[#allocation3 + $0x30] sm:$0xff] %vm979_vm1, %v969_v7  ;;  %v970_v3 = vadd.f32 %v954_v63, %v890_v33  ;;  %v955_v32 = vmul.f32 %v1790_v9, %v2550_v11  ;;  %1811 = vpow2.f32 %v879_v0  ;;  %v945_v36 = vmul.f32 1.442695, %v914_v12 }
 0x35b   : > { %v1794_v8 = vpop.eup %1793  ;;  %v892_v40 = vmul.f32 %v1792_v48, %v828_v20  ;;  %1813 = vpow2.f32 %v943_v49 }
 0x35c   : > { %v1796_v35 = vpop.eup %1795  ;;  %987 = vst.msk [vmem:[#allocation3 + $0x38] sm:$0xff] %vm979_vm1, %v970_v3  ;;  %v971_v6 = vadd.f32 %v955_v32, %v891_v51  ;;  %v956_v25 = vmul.f32 %v1794_v8, %v2548_v10  ;;  %1815 = vpow2.f32 %v881_v39 }
 0x35d   : > { %v1798_v56 = vpop.eup %1797  ;;  %v893_v2 = vmul.f32 %v1796_v35, %v829_v29  ;;  %1817 = vpow2.f32 %v945_v36 }
 0x35e   : > { %v1800_v21 = vpop.eup %1799  ;;  %988 = vst.msk [vmem:[#allocation3 + $0x40] sm:$0xff] %vm979_vm1, %v971_v6  ;;  %v972_v11 = vadd.f32 %v956_v25, %v892_v40  ;;  %v957_v61 = vmul.f32 %v1798_v56, %v2554_v15 }
 0x35f   : > { %v1802_v26 = vpop.eup %1801  ;;  %v894_v57 = vmul.f32 %v1800_v21, %v830_v27 }
 0x360   : > { %v1804_v60 = vpop.eup %1803  ;;  %989 = vst.msk [vmem:[#allocation3 + $0x48] sm:$0xff] %vm979_vm1, %v972_v11  ;;  %v973_v1 = vadd.f32 %v957_v61, %v893_v2  ;;  %v958_v10 = vmul.f32 %v1802_v26, %v2552_v14 }
 0x361   : > { %v1806_v50 = vpop.eup %1805  ;;  %v895_v5 = vmul.f32 %v1804_v60, %v831_v41 }
 0x362   : > { %v1808_v59 = vpop.eup %1807  ;;  %990 = vst.msk [vmem:[#allocation3 + $0x50] sm:$0xff] %vm979_vm1, %v973_v1  ;;  %v974_v38 = vadd.f32 %v958_v10, %v894_v57  ;;  %v959_v53 = vmul.f32 %v1806_v50, %v2558_v17 }
 0x363   : > { %v1810_v15 = vpop.eup %1809  ;;  %v896_v54 = vmul.f32 %v1808_v59, %v832_v55 }
 0x364   : > { %v1812_v13 = vpop.eup %1811  ;;  %991 = vst.msk [vmem:[#allocation3 + $0x58] sm:$0xff] %vm979_vm1, %v974_v38  ;;  %v975_v52 = vadd.f32 %v959_v53, %v895_v5  ;;  %v960_v37 = vmul.f32 %v1810_v15, %v2556_v16  ;;  %v1022_v16 = vlaneseq (!%p1018_p3) }
 0x365   : > { %v1814_v14 = vpop.eup %1813  ;;  %v897_v62 = vmul.f32 %v1812_v13, %v833_v58 }
 0x366   : > { %v1816_v33 = vpop.eup %1815  ;;  %992 = vst.msk [vmem:[#allocation3 + $0x60] sm:$0xff] %vm979_vm1, %v975_v52  ;;  %v976_v0 = vadd.f32 %v960_v37, %v896_v54  ;;  %v961_v49 = vmul.f32 %v1814_v14, %v2562_v19  ;;  %1021 = sbr.rel (%p1018_p3) target bundleno = 1051 (0x41b), region = 48  ;;  %v2737_v19 = vstv (!%p1018_p3), %s2630_s12  ;;  %v1023_v9 = vshrl.u32 (!%p1018_p3), %v1022_v16, 7  ;;  %v3008_v54 = vld [vmem:[#allocation19_spill] sm:$0xff] (!%p1018_p3)  ;;  %v3009_v52 = vld [vmem:[#allocation20_spill] sm:$0xff] (!%p1018_p3)  ;;  %v3011_v14 = vld [vmem:[#allocation22_spill] sm:$0xff] (!%p1018_p3) }
 0x367   : > { %v1818_v28 = vpop.eup %1817  ;;  %v898_v17 = vmul.f32 %v1816_v33, %v834_v4  ;;  %v1057_v51 = vand.u32 (!%p1018_p3), 127, %v1022_v16  ;;  %v3012_v33 = vld [vmem:[#allocation23_spill] sm:$0xff] (!%p1018_p3) }
 0x368   : > { %993 = vst.msk [vmem:[#allocation3 + $0x68] sm:$0xff] %vm979_vm1, %v976_v0  ;;  %v977_v7 = vadd.f32 %v961_v49, %v897_v62  ;;  %v962_v63 = vmul.f32 %v1818_v28, %v2560_v18  ;;  %v1040_v18 = vadd.s32 (!%p1018_p3), %v2737_v19, %v1023_v9  ;;  %v1025_v48 = vadd.s32 (!%p1018_p3), 16, %v1023_v9  ;;  %v1092_v49 = vld [vmem:[%s2377_s23] sm:$0xff] (!%p1018_p3) }
 0x369   : > { %v2741_v12 = vadd.s32 (!%p1018_p3), %v1058_v24, %v1057_v51  ;;  %v1026_v3 = vadd.s32 (!%p1018_p3), 24, %v1023_v9  ;;  %v1024_v32 = vadd.s32 (!%p1018_p3), 8, %v1023_v9  ;;  %v1028_v29 = vadd.s32 (!%p1018_p3), 40, %v1023_v9 }
 0x36a   : > { %994 = vst.msk [vmem:[#allocation3 + $0x70] sm:$0xff] %vm979_vm1, %v977_v7  ;;  %v978_v20 = vadd.f32 %v962_v63, %v898_v17  ;;  %v1027_v39 = vadd.s32 (!%p1018_p3), 32, %v1023_v9  ;;  %v1042_v8 = vadd.s32 (!%p1018_p3), %v2737_v19, %v1025_v48  ;;  %v1029_v36 = vadd.s32 (!%p1018_p3), 48, %v1023_v9  ;;  %v1094_v17 = vld [vmem:[%s2377_s23 + $0x10] sm:$0xff] (!%p1018_p3)  ;;  %v1097_v48 = vld [vmem:[%s2377_s23 + $0x28] sm:$0xff] (!%p1018_p3) }
 0x36b   : > { %vm1060_vm2 = vcmp.eq.s32.totalorder (!%p1018_p3), %v1040_v18, %v2741_v12  ;;  %v1043_v40 = vadd.s32 (!%p1018_p3), %v2737_v19, %v1026_v3  ;;  %v1041_v6 = vadd.s32 (!%p1018_p3), %v2737_v19, %v1024_v32  ;;  %v1045_v27 = vadd.s32 (!%p1018_p3), %v2737_v19, %v1028_v29  ;;  %v1096_v18 = vld [vmem:[%s2377_s23 + $0x20] sm:$0xff] (!%p1018_p3) }
 0x36c   : > { %995 = vst.msk [vmem:[#allocation3 + $0x78] sm:$0xff] %vm979_vm1, %v978_v20  ;;  %v1076_v35 = vsel (!%p1018_p3), %vm1060_vm2, %v2401_v30, 0.0  ;;  %v1044_v25 = vadd.s32 (!%p1018_p3), %v2737_v19, %v1027_v39  ;;  %vm1062_vm3 = vcmp.eq.s32.totalorder (!%p1018_p3), %v1042_v8, %v2741_v12  ;;  %v1030_v56 = vadd.s32 (!%p1018_p3), 56, %v1023_v9  ;;  %v1093_v20 = vld [vmem:[%s2377_s23 + $0x8] sm:$0xff] (!%p1018_p3)  ;;  %v1098_v39 = vld [vmem:[%s2377_s23 + $0x30] sm:$0xff] (!%p1018_p3) }
 0x36d   : > { %1108 = vadd.xlane.f32.xlu0 %v1076_v35  ;;  %vm1063_vm4 = vcmp.eq.s32.totalorder %v1043_v40, %v2741_v12  ;;  %v1078_v2 = vsel %vm1062_vm3, %v2395_v22, 0.0  ;;  %vm1061_vm5 = vcmp.eq.s32.totalorder %v1041_v6, %v2741_v12  ;;  %v1046_v30 = vadd.s32 %v2737_v19, %v1029_v36  ;;  %v1099_v40 = vld [vmem:[%s2377_s23 + $0x38] sm:$0xff] }
 0x36e   : > { %1112 = vadd.xlane.f32.xlu1 %v1078_v2  ;;  %v1077_v21 = vsel %vm1061_vm5, %v2413_v42, 0.0  ;;  %vm1064_vm6 = vcmp.eq.s32.totalorder %v1044_v25, %v2741_v12  ;;  %v1079_v11 = vsel %vm1063_vm4, %v2403_v31, 0.0  ;;  %vm1065_vm7 = vcmp.eq.s32.totalorder %v1045_v27, %v2741_v12  ;;  %v1100_v25 = vld [vmem:[%s2377_s23 + $0x40] sm:$0xff] }
 0x36f   : > { %v1047_v61 = vadd.s32 %v2737_v19, %v1030_v56  ;;  %v1032_v41 = vadd.s32 72, %v1023_v9  ;;  %v1031_v26 = vadd.s32 64, %v1023_v9  ;;  %v1080_v22 = vsel %vm1064_vm6, %v2425_v46, 0.0  ;;  %v1101_v56 = vld [vmem:[%s2377_s23 + $0x48] sm:$0xff] }
 0x370   : > { %vm1066_vm8 = vcmp.eq.s32.totalorder %v1046_v30, %v2741_v12  ;;  %v1033_v57 = vadd.s32 80, %v1023_v9  ;;  %v1081_v60 = vsel %vm1065_vm7, %v2427_v47, 0.0  ;;  %v1034_v1 = vadd.s32 88, %v1023_v9 }
 0x371   : > { %1110 = vadd.xlane.f32.xlu0 %v1077_v21  ;;  %v1048_v42 = vadd.s32 %v2737_v19, %v1031_v26  ;;  %vm1067_vm9 = vcmp.eq.s32.totalorder %v1047_v61, %v2741_v12  ;;  %v1049_v31 = vadd.s32 %v2737_v19, %v1032_v41  ;;  %v1082_v10 = vsel %vm1066_vm8, %v2419_v44, 0.0  ;;  %v1103_v41 = vld [vmem:[%s2377_s23 + $0x58] sm:$0xff] }
 0x372   : > { %1114 = vadd.xlane.f32.xlu1 %v1079_v11  ;;  %v1050_v46 = vadd.s32 %v2737_v19, %v1033_v57  ;;  %v1035_v55 = vadd.s32 96, %v1023_v9  ;;  %v1083_v50 = vsel %vm1067_vm9, %v2421_v45, 0.0  ;;  %v1051_v47 = vadd.s32 %v2737_v19, %v1034_v1  ;;  %v1102_v11 = vld [vmem:[%s2377_s23 + $0x50] sm:$0xff]  ;;  %v1104_v57 = vld [vmem:[%s2377_s23 + $0x60] sm:$0xff] }
 0x373   : > { %vm1068_vm10 = vcmp.eq.s32.totalorder %v1048_v42, %v2741_v12  ;;  %vm1069_vm11 = vcmp.eq.s32.totalorder %v1049_v31, %v2741_v12  ;;  %v1036_v5 = vadd.s32 104, %v1023_v9  ;;  %v1037_v38 = vadd.s32 112, %v1023_v9  ;;  %v1105_v31 = vld [vmem:[%s2377_s23 + $0x68] sm:$0xff] }
 0x374   : > { %v1084_v59 = vsel %vm1068_vm10, %v2407_v34, 0.0  ;;  %vm1070_vm12 = vcmp.eq.s32.totalorder %v1050_v46, %v2741_v12  ;;  %v1052_v44 = vadd.s32 %v2737_v19, %v1035_v55  ;;  %v1085_v53 = vsel %vm1069_vm11, %v2415_v43, 0.0  ;;  %v1106_v55 = vld [vmem:[%s2377_s23 + $0x70] sm:$0xff] }
 0x375   : > { %1116 = vadd.xlane.f32.xlu0 %v1080_v22  ;;  %vm1071_vm13 = vcmp.eq.s32.totalorder %v1051_v47, %v2741_v12  ;;  %v1053_v45 = vadd.s32 %v2737_v19, %v1036_v5  ;;  %v1038_v58 = vadd.s32 120, %v1023_v9  ;;  %v1086_v15 = vsel %vm1070_vm12, %v2397_v23, 0.0  ;;  %v3010_v23 = vld [vmem:[#allocation21_spill] sm:$0xff] }
 0x376   : > { %1118 = vadd.xlane.f32.xlu1 %v1081_v60  ;;  %vm1072_vm14 = vcmp.eq.s32.totalorder %v1052_v44, %v2741_v12  ;;  %v1054_v34 = vadd.s32 %v2737_v19, %v1037_v38  ;;  %v1087_v13 = vsel %vm1071_vm13, %v3008_v54, 0.0  ;;  %v1107_v47 = vld [vmem:[%s2377_s23 + $0x78] sm:$0xff] }
 0x377   : > { %vm1073_vm15 = vcmp.eq.s32.totalorder %v1053_v45, %v2741_v12  ;;  %v1055_v43 = vadd.s32 %v2737_v19, %v1038_v58  ;;  %v1088_v37 = vsel %vm1072_vm14, %v3009_v52, 0.0  ;;  %v1095_v19 = vld [vmem:[%s2377_s23 + $0x18] sm:$0xff] }
 0x378   : > { %vm1074_vm0 = vcmp.eq.s32.totalorder %v1054_v34, %v2741_v12  ;;  %v1089_v4 = vsel %vm1073_vm15, %v3010_v23, 0.0 }
 0x379   : > { %1120 = vadd.xlane.f32.xlu0 %v1082_v10  ;;  %vm1075_vm2 = vcmp.eq.s32.totalorder %v1055_v43, %v2741_v12  ;;  %v1090_v62 = vsel %vm1074_vm0, %v3011_v14, 0.0 }
 0x37a   : > { %1122 = vadd.xlane.f32.xlu1 %v1083_v50  ;;  %v1091_v0 = vsel %vm1075_vm2, %v3012_v33, 0.0 }
 0x37d   : > { %1124 = vadd.xlane.f32.xlu0 %v1084_v59 }
 0x37e   : > { %1126 = vadd.xlane.f32.xlu1 %v1085_v53 }
 0x381   : > { %1128 = vadd.xlane.f32.xlu0 %v1086_v15 }
 0x382   : > { %1130 = vadd.xlane.f32.xlu1 %v1087_v13 }
 0x385   : > { %1132 = vadd.xlane.f32.xlu0 %v1088_v37 }
 0x386   : > { %1134 = vadd.xlane.f32.xlu1 %v1089_v4 }
 0x389   : > { %1136 = vadd.xlane.f32.xlu0 %v1090_v62 }
 0x38a   : > { %1138 = vadd.xlane.f32.xlu1 %v1091_v0 }
 0x3fa   : > { %v1109_v28 = vpop.xlane.xlu0 %1108 }
 0x3fb   : > { %v1140_v7 = vadd.f32 %v1109_v28, %v1092_v49  ;;  %v1113_v63 = vpop.xlane.xlu1 %1112 }
 0x3fc   : > { %v1142_v16 = vadd.f32 %v1113_v63, %v1094_v17 }
 0x3fd   : > { %1156 = vst.msk [vmem:[%s2377_s23] sm:$0xff] %vm979_vm1, %v1140_v7 }
 0x3fe   : > { %v1111_v24 = vpop.xlane.xlu0 %1110  ;;  %1158 = vst.msk [vmem:[%s2377_s23 + $0x10] sm:$0xff] %vm979_vm1, %v1142_v16 }
 0x3ff   : > { %v1141_v9 = vadd.f32 %v1111_v24, %v1093_v20  ;;  %v1115_v51 = vpop.xlane.xlu1 %1114 }
 0x400   : > { %v1143_v12 = vadd.f32 %v1115_v51, %v1095_v19 }
 0x401   : > { %1157 = vst.msk [vmem:[%s2377_s23 + $0x8] sm:$0xff] %vm979_vm1, %v1141_v9 }
 0x402   : > { %v1117_v3 = vpop.xlane.xlu0 %1116  ;;  %1159 = vst.msk [vmem:[%s2377_s23 + $0x18] sm:$0xff] %vm979_vm1, %v1143_v12 }
 0x403   : > { %v1144_v32 = vadd.f32 %v1117_v3, %v1096_v18  ;;  %v1119_v29 = vpop.xlane.xlu1 %1118 }
 0x404   : > { %v1145_v8 = vadd.f32 %v1119_v29, %v1097_v48 }
 0x405   : > { %1160 = vst.msk [vmem:[%s2377_s23 + $0x20] sm:$0xff] %vm979_vm1, %v1144_v32 }
 0x406   : > { %v1121_v36 = vpop.xlane.xlu0 %1120  ;;  %1161 = vst.msk [vmem:[%s2377_s23 + $0x28] sm:$0xff] %vm979_vm1, %v1145_v8 }
 0x407   : > { %v1146_v35 = vadd.f32 %v1121_v36, %v1098_v39  ;;  %v1123_v6 = vpop.xlane.xlu1 %1122 }
 0x408   : > { %v1147_v27 = vadd.f32 %v1123_v6, %v1099_v40 }
 0x409   : > { %1162 = vst.msk [vmem:[%s2377_s23 + $0x30] sm:$0xff] %vm979_vm1, %v1146_v35 }
 0x40a   : > { %v1125_v2 = vpop.xlane.xlu0 %1124  ;;  %1163 = vst.msk [vmem:[%s2377_s23 + $0x38] sm:$0xff] %vm979_vm1, %v1147_v27 }
 0x40b   : > { %v1148_v21 = vadd.f32 %v1125_v2, %v1100_v25  ;;  %v1127_v30 = vpop.xlane.xlu1 %1126 }
 0x40c   : > { %v1149_v61 = vadd.f32 %v1127_v30, %v1101_v56 }
 0x40d   : > { %1164 = vst.msk [vmem:[%s2377_s23 + $0x40] sm:$0xff] %vm979_vm1, %v1148_v21 }
 0x40e   : > { %v1129_v26 = vpop.xlane.xlu0 %1128  ;;  %1165 = vst.msk [vmem:[%s2377_s23 + $0x48] sm:$0xff] %vm979_vm1, %v1149_v61 }
 0x40f   : > { %v1150_v22 = vadd.f32 %v1129_v26, %v1102_v11  ;;  %v1131_v42 = vpop.xlane.xlu1 %1130 }
 0x410   : > { %v1151_v60 = vadd.f32 %v1131_v42, %v1103_v41 }
 0x411   : > { %1166 = vst.msk [vmem:[%s2377_s23 + $0x50] sm:$0xff] %vm979_vm1, %v1150_v22 }
 0x412   : > { %v1133_v1 = vpop.xlane.xlu0 %1132  ;;  %1167 = vst.msk [vmem:[%s2377_s23 + $0x58] sm:$0xff] %vm979_vm1, %v1151_v60 }
 0x413   : > { %v1152_v10 = vadd.f32 %v1133_v1, %v1104_v57  ;;  %v1135_v46 = vpop.xlane.xlu1 %1134 }
 0x414   : > { %v1153_v50 = vadd.f32 %v1135_v46, %v1105_v31 }
 0x415   : > { %1168 = vst.msk [vmem:[%s2377_s23 + $0x60] sm:$0xff] %vm979_vm1, %v1152_v10 }
 0x416   : > { %v1137_v5 = vpop.xlane.xlu0 %1136  ;;  %1169 = vst.msk [vmem:[%s2377_s23 + $0x68] sm:$0xff] %vm979_vm1, %v1153_v50 }
 0x417   : > { %v1154_v59 = vadd.f32 %v1137_v5, %v1106_v55  ;;  %v1139_v44 = vpop.xlane.xlu1 %1138 }
 0x418   : > { %v1155_v38 = vadd.f32 %v1139_v44, %v1107_v47 }
 0x419   : > { %1170 = vst.msk [vmem:[%s2377_s23 + $0x70] sm:$0xff] %vm979_vm1, %v1154_v59 }
 0x41a   : > { %1171 = vst.msk [vmem:[%s2377_s23 + $0x78] sm:$0xff] %vm979_vm1, %v1155_v38 }
 0x41b PF: > { %s3013_s10 = sld [smem:[#allocation14_spill]] }
 0x421   : > { %p1493_p2 = scmp.ne.s32.totalorder %s3013_s10, 1 }
 0x422   : > { %v1192_v53 = vld [vmem:[#allocation3] sm:$0xff] (!%p1493_p2)  ;;  %v1193_v45 = vld [vmem:[#allocation3 + $0x8] sm:$0xff] (!%p1493_p2)  ;;  %v1194_v58 = vld [vmem:[#allocation3 + $0x10] sm:$0xff] (!%p1493_p2) }
 0x423   : > { %1175 = sbr.rel (%p1493_p2) target bundleno = 1090 (0x442), region = 52  ;;  %1819 = vlog2.f32 (!%p1493_p2), %v1192_v53  ;;  %v1195_v15 = vld [vmem:[#allocation3 + $0x18] sm:$0xff] (!%p1493_p2)  ;;  %v1196_v34 = vld [vmem:[#allocation3 + $0x20] sm:$0xff] (!%p1493_p2)  ;;  %v1197_v54 = vld [vmem:[#allocation3 + $0x28] sm:$0xff] (!%p1493_p2) }
 0x424   : > { %1821 = vlog2.f32 (!%p1493_p2), %v1193_v45  ;;  %v1198_v13 = vld [vmem:[#allocation3 + $0x30] sm:$0xff] (!%p1493_p2)  ;;  %v1199_v43 = vld [vmem:[#allocation3 + $0x38] sm:$0xff] (!%p1493_p2)  ;;  %v1200_v52 = vld [vmem:[#allocation3 + $0x40] sm:$0xff] (!%p1493_p2) }
 0x425   : > { %1823 = vlog2.f32 (!%p1493_p2), %v1194_v58  ;;  %v1201_v37 = vld [vmem:[#allocation3 + $0x48] sm:$0xff] (!%p1493_p2)  ;;  %v1202_v23 = vld [vmem:[#allocation3 + $0x50] sm:$0xff] (!%p1493_p2)  ;;  %v1203_v4 = vld [vmem:[#allocation3 + $0x58] sm:$0xff] (!%p1493_p2) }
 0x426   : > { %1825 = vlog2.f32 (!%p1493_p2), %v1195_v15  ;;  %v1204_v14 = vld [vmem:[#allocation3 + $0x60] sm:$0xff] (!%p1493_p2)  ;;  %v1205_v0 = vld [vmem:[#allocation3 + $0x68] sm:$0xff] (!%p1493_p2)  ;;  %v1206_v7 = vld [vmem:[#allocation3 + $0x70] sm:$0xff] (!%p1493_p2) }
 0x427   : > { %1827 = vlog2.f32 (!%p1493_p2), %v1196_v34  ;;  %v1176_v33 = vld [vmem:[#allocation2] sm:$0xff] (!%p1493_p2)  ;;  %v1177_v17 = vld [vmem:[#allocation2 + $0x8] sm:$0xff] (!%p1493_p2)  ;;  %v1178_v16 = vld [vmem:[#allocation2 + $0x10] sm:$0xff] (!%p1493_p2) }
 0x428   : > { %1829 = vlog2.f32 (!%p1493_p2), %v1197_v54  ;;  %v1207_v19 = vld [vmem:[#allocation3 + $0x78] sm:$0xff] (!%p1493_p2)  ;;  %v1180_v32 = vld [vmem:[#allocation2 + $0x20] sm:$0xff] (!%p1493_p2)  ;;  %v1181_v40 = vld [vmem:[#allocation2 + $0x28] sm:$0xff] (!%p1493_p2) }
 0x429   : > { %1831 = vlog2.f32 (!%p1493_p2), %v1198_v13  ;;  %v1179_v18 = vld [vmem:[#allocation2 + $0x18] sm:$0xff] (!%p1493_p2)  ;;  %v1182_v25 = vld [vmem:[#allocation2 + $0x30] sm:$0xff] (!%p1493_p2)  ;;  %v1184_v41 = vld [vmem:[#allocation2 + $0x40] sm:$0xff] (!%p1493_p2) }
 0x42a   : > { %1833 = vlog2.f32 %v1199_v43  ;;  %v1183_v21 = vld [vmem:[#allocation2 + $0x38] sm:$0xff]  ;;  %v1185_v57 = vld [vmem:[#allocation2 + $0x48] sm:$0xff]  ;;  %v1186_v10 = vld [vmem:[#allocation2 + $0x50] sm:$0xff] }
 0x42b   : > { %1835 = vlog2.f32 %v1200_v52  ;;  %v1187_v47 = vld [vmem:[#allocation2 + $0x58] sm:$0xff]  ;;  %v1188_v38 = vld [vmem:[#allocation2 + $0x60] sm:$0xff]  ;;  %v1189_v15 = vld [vmem:[#allocation2 + $0x68] sm:$0xff] }
 0x42c   : > { %1837 = vlog2.f32 %v1201_v37  ;;  %v1190_v43 = vld [vmem:[#allocation2 + $0x70] sm:$0xff] }
 0x42d   : > { %v1820_v62 = vpop.eup %1819  ;;  %1839 = vlog2.f32 %v1202_v23 }
 0x42e   : > { %v1822_v49 = vpop.eup %1821  ;;  %v1209_v28 = vmul.f32 0.6931472, %v1820_v62  ;;  %1841 = vlog2.f32 %v1203_v4  ;;  %v1191_v4 = vld [vmem:[#allocation2 + $0x78] sm:$0xff] }
 0x42f   : > { %v1824_v63 = vpop.eup %1823  ;;  %v1211_v20 = vmul.f32 0.6931472, %v1822_v49  ;;  %1843 = vlog2.f32 %v1204_v14 }
 0x430   : > { %v1826_v24 = vpop.eup %1825  ;;  %v1240_v9 = vadd.f32 %v1209_v28, %v1176_v33  ;;  %v1213_v51 = vmul.f32 0.6931472, %v1824_v63  ;;  %1845 = vlog2.f32 %v1205_v0 }
 0x431   : > { %v1828_v12 = vpop.eup %1827  ;;  %v1241_v48 = vadd.f32 %v1211_v20, %v1177_v17  ;;  %v1215_v3 = vmul.f32 0.6931472, %v1826_v24  ;;  %1847 = vlog2.f32 %v1206_v7 }
 0x432   : > { %v1830_v29 = vpop.eup %1829  ;;  %1256 = vst.msk [vmem:[%s2372_s26] sm:$0xff] %vm979_vm1, %v1240_v9  ;;  %v1242_v39 = vadd.f32 %v1213_v51, %v1178_v16  ;;  %v1217_v8 = vmul.f32 0.6931472, %v1828_v12  ;;  %1849 = vlog2.f32 %v1207_v19 }
 0x433   : > { %v1832_v36 = vpop.eup %1831  ;;  %1257 = vst.msk [vmem:[%s2372_s26 + $0x8] sm:$0xff] %vm979_vm1, %v1241_v48  ;;  %v1243_v35 = vadd.f32 %v1215_v3, %v1179_v18  ;;  %v1219_v6 = vmul.f32 0.6931472, %v1830_v29 }
 0x434   : > { %v1834_v27 = vpop.eup %1833  ;;  %1258 = vst.msk [vmem:[%s2372_s26 + $0x10] sm:$0xff] %vm979_vm1, %v1242_v39  ;;  %v1244_v56 = vadd.f32 %v1217_v8, %v1180_v32  ;;  %v1221_v2 = vmul.f32 0.6931472, %v1832_v36 }
 0x435   : > { %v1836_v30 = vpop.eup %1835  ;;  %1259 = vst.msk [vmem:[%s2372_s26 + $0x18] sm:$0xff] %vm979_vm1, %v1243_v35  ;;  %v1245_v11 = vadd.f32 %v1219_v6, %v1181_v40  ;;  %v1223_v61 = vmul.f32 0.6931472, %v1834_v27 }
 0x436   : > { %v1838_v26 = vpop.eup %1837  ;;  %1260 = vst.msk [vmem:[%s2372_s26 + $0x20] sm:$0xff] %vm979_vm1, %v1244_v56  ;;  %v1246_v22 = vadd.f32 %v1221_v2, %v1182_v25  ;;  %v1225_v42 = vmul.f32 0.6931472, %v1836_v30 }
 0x437   : > { %v1840_v60 = vpop.eup %1839  ;;  %1261 = vst.msk [vmem:[%s2372_s26 + $0x28] sm:$0xff] %vm979_vm1, %v1245_v11  ;;  %v1247_v31 = vadd.f32 %v1223_v61, %v1183_v21  ;;  %v1227_v1 = vmul.f32 0.6931472, %v1838_v26 }
 0x438   : > { %v1842_v46 = vpop.eup %1841  ;;  %1262 = vst.msk [vmem:[%s2372_s26 + $0x30] sm:$0xff] %vm979_vm1, %v1246_v22  ;;  %v1248_v55 = vadd.f32 %v1225_v42, %v1184_v41  ;;  %v1229_v50 = vmul.f32 0.6931472, %v1840_v60 }
 0x439   : > { %v1844_v5 = vpop.eup %1843  ;;  %1263 = vst.msk [vmem:[%s2372_s26 + $0x38] sm:$0xff] %vm979_vm1, %v1247_v31  ;;  %v1249_v59 = vadd.f32 %v1227_v1, %v1185_v57  ;;  %v1231_v44 = vmul.f32 0.6931472, %v1842_v46 }
 0x43a   : > { %v1846_v53 = vpop.eup %1845  ;;  %1264 = vst.msk [vmem:[%s2372_s26 + $0x40] sm:$0xff] %vm979_vm1, %v1248_v55  ;;  %v1250_v45 = vadd.f32 %v1229_v50, %v1186_v10  ;;  %v1233_v58 = vmul.f32 0.6931472, %v1844_v5 }
 0x43b   : > { %v1848_v34 = vpop.eup %1847  ;;  %1265 = vst.msk [vmem:[%s2372_s26 + $0x48] sm:$0xff] %vm979_vm1, %v1249_v59  ;;  %v1251_v54 = vadd.f32 %v1231_v44, %v1187_v47  ;;  %v1235_v13 = vmul.f32 0.6931472, %v1846_v53 }
 0x43c   : > { %v1850_v52 = vpop.eup %1849  ;;  %1266 = vst.msk [vmem:[%s2372_s26 + $0x50] sm:$0xff] %vm979_vm1, %v1250_v45  ;;  %v1252_v37 = vadd.f32 %v1233_v58, %v1188_v38  ;;  %v1237_v23 = vmul.f32 0.6931472, %v1848_v34 }
 0x43d   : > { %1267 = vst.msk [vmem:[%s2372_s26 + $0x58] sm:$0xff] %vm979_vm1, %v1251_v54  ;;  %v1253_v14 = vadd.f32 %v1235_v13, %v1189_v15  ;;  %v1239_v62 = vmul.f32 0.6931472, %v1850_v52 }
 0x43e   : > { %1268 = vst.msk [vmem:[%s2372_s26 + $0x60] sm:$0xff] %vm979_vm1, %v1252_v37  ;;  %v1254_v33 = vadd.f32 %v1237_v23, %v1190_v43 }
 0x43f   : > { %1269 = vst.msk [vmem:[%s2372_s26 + $0x68] sm:$0xff] %vm979_vm1, %v1253_v14  ;;  %v1255_v0 = vadd.f32 %v1239_v62, %v1191_v4 }
 0x440   : > { %1270 = vst.msk [vmem:[%s2372_s26 + $0x70] sm:$0xff] %vm979_vm1, %v1254_v33 }
 0x441   : > { %1271 = vst.msk [vmem:[%s2372_s26 + $0x78] sm:$0xff] %vm979_vm1, %v1255_v0 }
 0x442 PF: > { %s3014_s23 = sld [smem:[#allocation14_spill]]  ;;  %s1494_s13 = sshll.u32 %s2049_s29, 1 }
 0x443   : > { %s1301_s14 = sshll.u32 %s2529_s16, 4  ;;  %s3015_s11 = sld [smem:[#allocation25_spill]]  ;;  %s2874_s14 = int_to_ptr.vmem [resolvable:$true] %s1301_s14 }
 0x444   : > { %s1278_s26 = scalar_lea.sflag [#allocation7], %s303_s30  ;;  %s1911_s28 = scalar_lea.vmem %s2874_s14, 16 }
 0x445   : > { %p1912_p11 = scmp.ne.s32.totalorder %s2874_s14, %s1911_s28  ;;  %p3016_p8 = scmp.ne.s32.totalorder %s2989_s17, 0 }
 0x446   : > { %s2069_s29 = smov [#allocation10]  }
 0x447   : > { %p1913_p0 = pnand %p1912_p11, %p3016_p8  ;;  %s1915_s10 = sshll.u32 %s2069_s29, 4  ;;  %s1916_s10 = int_to_ptr.vmem [resolvable:$false] %s1915_s10 }
 0x448   : > { %s1297_s1 = sadd.s32 %s3014_s23, %s1494_s13  ;;  %s1917_s16 = scalar_lea.vmem %s1916_s10, 32 }
 0x449   : > { %s1495_s12 = sshll.u32 %s1297_s1, 4  ;;  %p1914_p1 = pneg %p1913_p0 }
 0x44a   : > { %s1299_s18 = scalar_lea.hbm %s3015_s11, %s1495_s12  ;;  %p1918_p5 = scmp.lt.s32.totalorder %s2874_s14, %s1916_s10 }
 0x44b   : > { %p1919_p7 = scmp.lt.s32.totalorder %s1917_s16, %s1911_s28 }
 0x44d   : > { %p1920_p10 = por %p1919_p7, %p1918_p5 }
 0x44f   : > { %p1921_p9 = pnand %p1920_p10, %p1914_p1 }
 0x451   : > { %1924 = shalt.err (!%p1921_p9)
}
 0x452   : > { %s1925_s23 = scalar_lea.hbm %s1299_s18, 16  ;;  %s1929_s1 = scalar_lea.hbm %s3015_s11, 64 }
 0x453   : > { %p1926_p13 = scmp.ne.s32.totalorder %s1299_s18, %s1925_s23  ;;  %p1930_p12 = scmp.lt.u32.totalorder %s1299_s18, %s3015_s11 }
 0x454   : > { %p1931_p3 = scmp.lt.u32.totalorder %s1929_s1, %s1925_s23  ;;  %p1933_p11 = scmp.lt.u32.totalorder %s1925_s23, %s1299_s18 }
 0x455   : > { %p1927_p6 = pnand %p1926_p13, %p3016_p8 }
 0x456   : > { %p1932_p2 = por %p1931_p3, %p1930_p12 }
 0x457   : > { %p1928_p4 = pneg %p1927_p6 }
 0x458   : > { %p1934_p0 = por %p1933_p11, %p1932_p2 }
 0x45a   : > { %p1935_p1 = pnand %p1934_p0, %p1928_p4 }
 0x45c   : > { %1938 = shalt.err (!%p1935_p1)
}
 0x45d   : > { %1572 = dma.vmem_to_hbm [thread:$0]  (%p3016_p8), %s2874_s14, 16, %s1299_s18, %s1278_s26  }
 0x45e PF: > { %p1586_p5 = scmp.ge.s32.totalorder %s2061_s7, 2  ;;  %s1325_s6 = sand.u32 1, %s2009_s20  }
 0x45f   : > { %p3017_p7 = scmp.ne.s32.totalorder %s2992_s9, 0  ;;  %s1326_s28 = scalar_lea.sflag [#allocation7], %s1325_s6 }
 0x461   : > { %p1582_p10 = pnand %p1586_p5, %p3017_p7 }
 0x463   : > { %2004 = dma.done.wait (!%p1582_p10), %s1326_s28, 16  }
 0x464   : > { %2006 = vsyncadd (!%p1582_p10), %s1326_s28, 4294967280  ;;  %s26_s7 = sadd.s32 1, %s2061_s7   ;;  %s3019_s28 = sld [smem:[#allocation15_spill]] }
 0x465   : > { %p2902_p9 = scmp.ge.s32.totalorder %s26_s7, 6   ;;  %s3020_s17 = sld [smem:[#allocation16_spill]] }
 0x466   : > { %s3021_s30 = sld [smem:[#allocation17_spill]]  ;;  %s3022_s6 = sld [smem:[#allocation18_spill]] }
 0x467   : > { %s3024_s20 = smov %s2013_s21  ;;  %s3025_s21 = smov %s2017_s22 }
 0x468   : > { %s3026_s22 = smov %s2295_s4  ;;  %s3027_s23 = smov %s2025_s24 }
 0x469   : > { %s3028_s24 = smov %s2029_s25  ;;  %s3029_s25 = smov %s2277_s19 }
 0x46a   : > { %s3030_s26 = smov %s2037_s0  ;;  %s3031_s0 = smov %s2041_s27 }
 0x46b   : > { %s3032_s27 = smov %s2292_s15  ;;  %s3033_s29 = smov %s3020_s17 }
 0x46c   :  { %25 = sbr.rel (!%p2902_p9) target bundleno = 16 (0x10), region = 126 }
 0x473   :  { %1338 = vsyncpa [#allocation6], 1 }
 0x474   :  { %1340 = vsyncpa [#allocation6 + $0x1], 1 }
 0x475   :  { %1341 = vsyncpa [#allocation9], 1 }
 0x476   :  { %1343 = vsyncpa [#allocation9 + $0x1], 1 }
 0x477   :  { %1344 = vsyncpa [#allocation7], 1 }
 0x478   :  { %1346 = vsyncpa [#allocation7 + $0x1], 1 }

</bundles_post_ra>
